<compile_context>
chip_gen: v7x
topology: tpu7x:2x2x1
jax: 0.10.0
libtpu: 0.0.40
codegen_flags: <defaults>
</compile_context>

<pallas_src>
import jax
import jax.numpy as jnp
from jax.experimental import pallas as pl
from jax.experimental.pallas import tpu as pltpu


def _log_softmax_lastdim(z):
    m = jnp.max(z, axis=-1, keepdims=True)
    s = jnp.sum(jnp.exp(z - m), axis=-1, keepdims=True)
    return (z - m) - jnp.log(s)


def jazz_lstm_kernel(x_ref,        # [T, B, E]   embedded tokens (time-major)
                     w_ih_ref,     # [E, 4H]     input -> gates
                     w_hh_ref,     # [H, 4H]     hidden -> gates
                     b_ref,        # [1, 4H]     bias_ih + bias_hh
                     w_head_ref,   # [H, N+D]    fused note|duration head
                     b_head_ref,   # [1, N+D]
                     note_out_ref,  # [T, B, N]  log-softmax output
                     dur_out_ref,   # [T, B, D]  log-softmax output
                     xproj_ref,     # VMEM scratch [T, B, 4H]
                     hs_ref):       # VMEM scratch [T, B, H]
    T, B, E = x_ref.shape
    H = w_hh_ref.shape[0]
    N = note_out_ref.shape[-1]
    D = dur_out_ref.shape[-1]

    # ---- Batched, time-independent input projection (off the critical path).
    x_flat = x_ref[...].reshape(T * B, E)
    xproj = jnp.dot(x_flat, w_ih_ref[...],
                    preferred_element_type=jnp.float32) + b_ref[...]
    xproj_ref[...] = xproj.reshape(T, B, 4 * H)

    w_hh = w_hh_ref[...]

    # ---- Serial LSTM recurrence: only  h @ W_hh + X[t]  per step.
    def step(t, carry):
        h, c = carry
        gates = xproj_ref[t] + jnp.dot(h, w_hh,
                                       preferred_element_type=jnp.float32)
        i_g = jax.nn.sigmoid(gates[:, 0 * H:1 * H])
        f_g = jax.nn.sigmoid(gates[:, 1 * H:2 * H])
        g_g = jnp.tanh(gates[:, 2 * H:3 * H])
        o_g = jax.nn.sigmoid(gates[:, 3 * H:4 * H])
        c_new = f_g * c + i_g * g_g
        h_new = o_g * jnp.tanh(c_new)
        hs_ref[t] = h_new                      # lane-dense store (H = 128)
        return (h_new, c_new)

    h0 = jnp.zeros((B, H), jnp.float32)
    c0 = jnp.zeros((B, H), jnp.float32)
    jax.lax.fori_loop(0, T, step, (h0, c0), unroll=True)

    # ---- Fused heads + log-softmax, batched over all T*B rows after the loop.
    hs_flat = hs_ref[...].reshape(T * B, H)
    logits = jnp.dot(hs_flat, w_head_ref[...],
                     preferred_element_type=jnp.float32) + b_head_ref[...]
    note_out_ref[...] = _log_softmax_lastdim(logits[:, :N]).reshape(T, B, N)
    dur_out_ref[...] = _log_softmax_lastdim(logits[:, N:N + D]).reshape(T, B, D)


@jax.jit
def jazz_forward(tokens, params):
    """tokens: int32 [B, T].  Returns (note_log_probs [B,T,N], dur_log_probs [B,T,D])."""
    B, T = tokens.shape
    H = params["w_hh"].shape[0]
    N = params["w_note"].shape[1]
    D = params["w_dur"].shape[1]
    E = params["emb"].shape[1]

    # Pad batch to a full f32 sublane group (>= 8 rows per MXU call).
    B_pad = max(8, ((B + 7) // 8) * 8)

    # Embedding lookup as an int gather in the wrapper (no one-hot blowup).
    # TODO(synk): small dynamic gather kept in XLA; in-kernel it would be a
    # one-hot matmul or DMA gather with no benefit at this table size.
    x_emb = params["emb"][tokens]                       # [B, T, E]
    x_emb = jnp.transpose(x_emb, (1, 0, 2))             # [T, B, E]
    if B_pad != B:
        x_emb = jnp.pad(x_emb, ((0, 0), (0, B_pad - B), (0, 0)))

    # Fuse the two heads into one weight/bias (one matmul, slice afterwards).
    w_head = jnp.concatenate([params["w_note"], params["w_dur"]], axis=1)   # [H, N+D]
    b_head = jnp.concatenate([params["b_note"], params["b_dur"]], axis=1)   # [1, N+D]

    vmem = pl.BlockSpec(memory_space=pltpu.MemorySpace.VMEM)
    note_tb, dur_tb = pl.pallas_call(
        jazz_lstm_kernel,
        out_shape=(jax.ShapeDtypeStruct((T, B_pad, N), jnp.float32),
                   jax.ShapeDtypeStruct((T, B_pad, D), jnp.float32)),
        in_specs=[vmem] * 6,
        out_specs=(vmem, vmem),
        scratch_shapes=[pltpu.VMEM((T, B_pad, 4 * H), jnp.float32),
                        pltpu.VMEM((T, B_pad, H), jnp.float32)],
        compiler_params=pltpu.CompilerParams(vmem_limit_bytes=64 * 1024 * 1024),
    )(x_emb, params["w_ih"], params["w_hh"], params["b"], w_head, b_head)

    note = jnp.transpose(note_tb, (1, 0, 2))[:B]        # [B, T, N]
    dur = jnp.transpose(dur_tb, (1, 0, 2))[:B]          # [B, T, D]
    return note, dur


def jazz_forward_ref(tokens, params):
    """Pure-JAX reference reproducing the PyTorch forward semantics."""
    emb = params["emb"][tokens]                                   # [B, T, E]
    B, T, _ = emb.shape
    H = params["w_hh"].shape[0]

    def step(carry, x_t):
        h, c = carry
        gates = x_t @ params["w_ih"] + h @ params["w_hh"] + params["b"]
        i_g = jax.nn.sigmoid(gates[:, 0 * H:1 * H])
        f_g = jax.nn.sigmoid(gates[:, 1 * H:2 * H])
        g_g = jnp.tanh(gates[:, 2 * H:3 * H])
        o_g = jax.nn.sigmoid(gates[:, 3 * H:4 * H])
        c_new = f_g * c + i_g * g_g
        h_new = o_g * jnp.tanh(c_new)
        return (h_new, c_new), h_new

    h0 = jnp.zeros((B, H), jnp.float32)
    c0 = jnp.zeros((B, H), jnp.float32)
    _, hs = jax.lax.scan(step, (h0, c0), jnp.transpose(emb, (1, 0, 2)))
    hs = jnp.transpose(hs, (1, 0, 2))                             # [B, T, H]
    note = jax.nn.log_softmax(hs @ params["w_note"] + params["b_note"], axis=2)
    dur = jax.nn.log_softmax(hs @ params["w_dur"] + params["b_dur"], axis=2)
    return note, dur


def make_params(key, vocab_size, note_out, dur_out, embedding_dim=32, hidden_dim=128):
    ks = jax.random.split(key, 8)
    s = 0.1
    return {
        "emb":    s * jax.random.normal(ks[0], (vocab_size, embedding_dim), jnp.float32),
        "w_ih":   s * jax.random.normal(ks[1], (embedding_dim, 4 * hidden_dim), jnp.float32),
        "w_hh":   s * jax.random.normal(ks[2], (hidden_dim, 4 * hidden_dim), jnp.float32),
        "b":      s * jax.random.normal(ks[3], (1, 4 * hidden_dim), jnp.float32),
        "w_note": s * jax.random.normal(ks[4], (hidden_dim, note_out), jnp.float32),
        "b_note": s * jax.random.normal(ks[5], (1, note_out), jnp.float32),
        "w_dur":  s * jax.random.normal(ks[6], (hidden_dim, dur_out), jnp.float32),
        "b_dur":  s * jax.random.normal(ks[7], (1, dur_out), jnp.float32),
    }


if __name__ == "__main__":
    B, T = 2, 8
    VOCAB, NOTE_OUT, DUR_OUT = 24, 16, 8
    EMB, HID = 32, 128

    key = jax.random.PRNGKey(0)
    k_tok, k_par = jax.random.split(key)
    tokens = jax.random.randint(k_tok, (B, T), 0, VOCAB, dtype=jnp.int32)
    params = make_params(k_par, VOCAB, NOTE_OUT, DUR_OUT, EMB, HID)

    note_out, dur_out = jazz_forward(tokens, params)
    jax.block_until_ready((note_out, dur_out))

    note_ref, dur_ref = jazz_forward_ref(tokens, params)
    assert note_out.shape == (B, T, NOTE_OUT) and dur_out.shape == (B, T, DUR_OUT)
    assert jnp.allclose(note_out, note_ref, atol=1e-3, rtol=1e-3)
    assert jnp.allclose(dur_out, dur_ref, atol=1e-3, rtol=1e-3)

    print("KERNEL_OK")
</pallas_src>

<mosaic_0001>
module attributes {stable_mosaic.version = 11 : i64} {
  func.func @jazz_lstm_kernel(%arg0: memref<8x8x32xf32, #tpu.memory_space<vmem>>, %arg1: memref<32x512xf32, #tpu.memory_space<vmem>>, %arg2: memref<128x512xf32, #tpu.memory_space<vmem>>, %arg3: memref<1x512xf32, #tpu.memory_space<vmem>>, %arg4: memref<128x24xf32, #tpu.memory_space<vmem>>, %arg5: memref<1x24xf32, #tpu.memory_space<vmem>>, %arg6: memref<8x8x16xf32, #tpu.memory_space<vmem>>, %arg7: memref<8x8x8xf32, #tpu.memory_space<vmem>>, %arg8: memref<8x8x512xf32, #tpu.memory_space<vmem>>, %arg9: memref<8x8x128xf32, #tpu.memory_space<vmem>>) attributes {dimension_semantics = [], scalar_prefetch = 0 : i64, scratch_operands = 2 : i64, tpu.core_type = #tpu.core_type<tc>} {
    %c0 = arith.constant 0 : index
    %c0_0 = arith.constant 0 : index
    %c0_1 = arith.constant 0 : index
    %0 = vector.load %arg0[%c0, %c0_0, %c0_1] : memref<8x8x32xf32, #tpu.memory_space<vmem>>, vector<8x8x32xf32>
    %1 = vector.shape_cast %0 : vector<8x8x32xf32> to vector<64x32xf32>
    %c0_2 = arith.constant 0 : index
    %c0_3 = arith.constant 0 : index
    %2 = vector.load %arg1[%c0_2, %c0_3] : memref<32x512xf32, #tpu.memory_space<vmem>>, vector<32x512xf32>
    %cst = arith.constant dense<0.000000e+00> : vector<64x512xf32>
    %3 = tpu.matmul %1, %2, %cst {dimension_numbers = #tpu.dot_dimension_numbers<[1], [0], [0], [1], [0, 0, 1, 1], [], []>} : vector<64x32xf32>, vector<32x512xf32>, vector<64x512xf32> -> vector<64x512xf32>
    %c0_4 = arith.constant 0 : index
    %c0_5 = arith.constant 0 : index
    %4 = vector.load %arg3[%c0_4, %c0_5] : memref<1x512xf32, #tpu.memory_space<vmem>>, vector<1x512xf32>
    %5 = vector.broadcast %4 : vector<1x512xf32> to vector<64x512xf32>
    %6 = arith.addf %3, %5 : vector<64x512xf32>
    %7 = vector.shape_cast %6 : vector<64x512xf32> to vector<8x8x512xf32>
    %c0_6 = arith.constant 0 : index
    %c0_7 = arith.constant 0 : index
    %c0_8 = arith.constant 0 : index
    %8 = vector.load %arg8[%c0_6, %c0_7, %c0_8] : memref<8x8x512xf32, #tpu.memory_space<vmem>>, vector<8x8x512xf32>
    tpu.vector_store %arg8[%c0_6, %c0_7, %c0_8], %7 {strides = array<i32>} : memref<8x8x512xf32, #tpu.memory_space<vmem>>, vector<8x8x512xf32>,
    %c0_9 = arith.constant 0 : index
    %c0_10 = arith.constant 0 : index
    %9 = vector.load %arg2[%c0_9, %c0_10] : memref<128x512xf32, #tpu.memory_space<vmem>>, vector<128x512xf32>
    %cst_11 = arith.constant 0.000000e+00 : f32
    %10 = vector.broadcast %cst_11 : f32 to vector<8x128xf32>
    %cst_12 = arith.constant 0.000000e+00 : f32
    %11 = vector.broadcast %cst_12 : f32 to vector<8x128xf32>
    %c0_i32 = arith.constant 0 : i32
    %12 = arith.index_cast %c0_i32 : i32 to index
    %c0_13 = arith.constant 0 : index
    %c0_14 = arith.constant 0 : index
    %13 = vector.load %arg8[%12, %c0_13, %c0_14] : memref<8x8x512xf32, #tpu.memory_space<vmem>>, vector<1x8x512xf32>
    %14 = vector.shape_cast %13 : vector<1x8x512xf32> to vector<8x512xf32>
    %cst_15 = arith.constant dense<0.000000e+00> : vector<8x512xf32>
    %15 = tpu.matmul %10, %9, %cst_15 {dimension_numbers = #tpu.dot_dimension_numbers<[1], [0], [0], [1], [0, 0, 1, 1], [], []>} : vector<8x128xf32>, vector<128x512xf32>, vector<8x512xf32> -> vector<8x512xf32>
    %16 = arith.addf %14, %15 : vector<8x512xf32>
    %17 = vector.extract_strided_slice %16 {offsets = [0, 0], sizes = [8, 128], strides = [1, 1]} : vector<8x512xf32> to vector<8x128xf32>
    %18 = arith.negf %17 : vector<8x128xf32>
    %19 = math.exp %18 : vector<8x128xf32>
    %cst_16 = arith.constant 1.000000e+00 : f32
    %20 = vector.broadcast %cst_16 : f32 to vector<8x128xf32>
    %21 = arith.addf %20, %19 : vector<8x128xf32>
    %22 = arith.divf %20, %21 : vector<8x128xf32>
    %23 = vector.extract_strided_slice %16 {offsets = [0, 128], sizes = [8, 128], strides = [1, 1]} : vector<8x512xf32> to vector<8x128xf32>
    %24 = arith.negf %23 : vector<8x128xf32>
    %25 = math.exp %24 : vector<8x128xf32>
    %cst_17 = arith.constant 1.000000e+00 : f32
    %26 = vector.broadcast %cst_17 : f32 to vector<8x128xf32>
    %27 = arith.addf %26, %25 : vector<8x128xf32>
    %28 = arith.divf %26, %27 : vector<8x128xf32>
    %29 = vector.extract_strided_slice %16 {offsets = [0, 256], sizes = [8, 128], strides = [1, 1]} : vector<8x512xf32> to vector<8x128xf32>
    %30 = math.tanh %29 : vector<8x128xf32>
    %31 = vector.extract_strided_slice %16 {offsets = [0, 384], sizes = [8, 128], strides = [1, 1]} : vector<8x512xf32> to vector<8x128xf32>
    %32 = arith.negf %31 : vector<8x128xf32>
    %33 = math.exp %32 : vector<8x128xf32>
    %cst_18 = arith.constant 1.000000e+00 : f32
    %34 = vector.broadcast %cst_18 : f32 to vector<8x128xf32>
    %35 = arith.addf %34, %33 : vector<8x128xf32>
    %36 = arith.divf %34, %35 : vector<8x128xf32>
    %37 = arith.mulf %28, %11 : vector<8x128xf32>
    %38 = arith.mulf %22, %30 : vector<8x128xf32>
    %39 = arith.addf %37, %38 : vector<8x128xf32>
    %40 = math.tanh %39 : vector<8x128xf32>
    %41 = arith.mulf %36, %40 : vector<8x128xf32>
    %42 = arith.index_cast %c0_i32 : i32 to index
    %c0_19 = arith.constant 0 : index
    %c0_20 = arith.constant 0 : index
    %43 = vector.load %arg9[%42, %c0_19, %c0_20] : memref<8x8x128xf32, #tpu.memory_space<vmem>>, vector<1x8x128xf32>
    %44 = vector.shape_cast %43 : vector<1x8x128xf32> to vector<8x128xf32>
    %45 = vector.shape_cast %41 : vector<8x128xf32> to vector<1x8x128xf32>
    tpu.vector_store %arg9[%42, %c0_19, %c0_20], %45 {strides = array<i32>} : memref<8x8x128xf32, #tpu.memory_space<vmem>>, vector<1x8x128xf32>,
    %c1_i32 = arith.constant 1 : i32
    %46 = arith.index_cast %c1_i32 : i32 to index
    %c0_21 = arith.constant 0 : index
    %c0_22 = arith.constant 0 : index
    %47 = vector.load %arg8[%46, %c0_21, %c0_22] : memref<8x8x512xf32, #tpu.memory_space<vmem>>, vector<1x8x512xf32>
    %48 = vector.shape_cast %47 : vector<1x8x512xf32> to vector<8x512xf32>
    %cst_23 = arith.constant dense<0.000000e+00> : vector<8x512xf32>
    %49 = tpu.matmul %41, %9, %cst_23 {dimension_numbers = #tpu.dot_dimension_numbers<[1], [0], [0], [1], [0, 0, 1, 1], [], []>} : vector<8x128xf32>, vector<128x512xf32>, vector<8x512xf32> -> vector<8x512xf32>
    %50 = arith.addf %48, %49 : vector<8x512xf32>
    %51 = vector.extract_strided_slice %50 {offsets = [0, 0], sizes = [8, 128], strides = [1, 1]} : vector<8x512xf32> to vector<8x128xf32>
    %52 = arith.negf %51 : vector<8x128xf32>
    %53 = math.exp %52 : vector<8x128xf32>
    %cst_24 = arith.constant 1.000000e+00 : f32
    %54 = vector.broadcast %cst_24 : f32 to vector<8x128xf32>
    %55 = arith.addf %54, %53 : vector<8x128xf32>
    %56 = arith.divf %54, %55 : vector<8x128xf32>
    %57 = vector.extract_strided_slice %50 {offsets = [0, 128], sizes = [8, 128], strides = [1, 1]} : vector<8x512xf32> to vector<8x128xf32>
    %58 = arith.negf %57 : vector<8x128xf32>
    %59 = math.exp %58 : vector<8x128xf32>
    %cst_25 = arith.constant 1.000000e+00 : f32
    %60 = vector.broadcast %cst_25 : f32 to vector<8x128xf32>
    %61 = arith.addf %60, %59 : vector<8x128xf32>
    %62 = arith.divf %60, %61 : vector<8x128xf32>
    %63 = vector.extract_strided_slice %50 {offsets = [0, 256], sizes = [8, 128], strides = [1, 1]} : vector<8x512xf32> to vector<8x128xf32>
    %64 = math.tanh %63 : vector<8x128xf32>
    %65 = vector.extract_strided_slice %50 {offsets = [0, 384], sizes = [8, 128], strides = [1, 1]} : vector<8x512xf32> to vector<8x128xf32>
    %66 = arith.negf %65 : vector<8x128xf32>
    %67 = math.exp %66 : vector<8x128xf32>
    %cst_26 = arith.constant 1.000000e+00 : f32
    %68 = vector.broadcast %cst_26 : f32 to vector<8x128xf32>
    %69 = arith.addf %68, %67 : vector<8x128xf32>
    %70 = arith.divf %68, %69 : vector<8x128xf32>
    %71 = arith.mulf %62, %39 : vector<8x128xf32>
    %72 = arith.mulf %56, %64 : vector<8x128xf32>
    %73 = arith.addf %71, %72 : vector<8x128xf32>
    %74 = math.tanh %73 : vector<8x128xf32>
    %75 = arith.mulf %70, %74 : vector<8x128xf32>
    %76 = arith.index_cast %c1_i32 : i32 to index
    %c0_27 = arith.constant 0 : index
    %c0_28 = arith.constant 0 : index
    %77 = vector.load %arg9[%76, %c0_27, %c0_28] : memref<8x8x128xf32, #tpu.memory_space<vmem>>, vector<1x8x128xf32>
    %78 = vector.shape_cast %77 : vector<1x8x128xf32> to vector<8x128xf32>
    %79 = vector.shape_cast %75 : vector<8x128xf32> to vector<1x8x128xf32>
    tpu.vector_store %arg9[%76, %c0_27, %c0_28], %79 {strides = array<i32>} : memref<8x8x128xf32, #tpu.memory_space<vmem>>, vector<1x8x128xf32>,
    %c2_i32 = arith.constant 2 : i32
    %80 = arith.index_cast %c2_i32 : i32 to index
    %c0_29 = arith.constant 0 : index
    %c0_30 = arith.constant 0 : index
    %81 = vector.load %arg8[%80, %c0_29, %c0_30] : memref<8x8x512xf32, #tpu.memory_space<vmem>>, vector<1x8x512xf32>
    %82 = vector.shape_cast %81 : vector<1x8x512xf32> to vector<8x512xf32>
    %cst_31 = arith.constant dense<0.000000e+00> : vector<8x512xf32>
    %83 = tpu.matmul %75, %9, %cst_31 {dimension_numbers = #tpu.dot_dimension_numbers<[1], [0], [0], [1], [0, 0, 1, 1], [], []>} : vector<8x128xf32>, vector<128x512xf32>, vector<8x512xf32> -> vector<8x512xf32>
    %84 = arith.addf %82, %83 : vector<8x512xf32>
    %85 = vector.extract_strided_slice %84 {offsets = [0, 0], sizes = [8, 128], strides = [1, 1]} : vector<8x512xf32> to vector<8x128xf32>
    %86 = arith.negf %85 : vector<8x128xf32>
    %87 = math.exp %86 : vector<8x128xf32>
    %cst_32 = arith.constant 1.000000e+00 : f32
    %88 = vector.broadcast %cst_32 : f32 to vector<8x128xf32>
    %89 = arith.addf %88, %87 : vector<8x128xf32>
    %90 = arith.divf %88, %89 : vector<8x128xf32>
    %91 = vector.extract_strided_slice %84 {offsets = [0, 128], sizes = [8, 128], strides = [1, 1]} : vector<8x512xf32> to vector<8x128xf32>
    %92 = arith.negf %91 : vector<8x128xf32>
    %93 = math.exp %92 : vector<8x128xf32>
    %cst_33 = arith.constant 1.000000e+00 : f32
    %94 = vector.broadcast %cst_33 : f32 to vector<8x128xf32>
    %95 = arith.addf %94, %93 : vector<8x128xf32>
    %96 = arith.divf %94, %95 : vector<8x128xf32>
    %97 = vector.extract_strided_slice %84 {offsets = [0, 256], sizes = [8, 128], strides = [1, 1]} : vector<8x512xf32> to vector<8x128xf32>
    %98 = math.tanh %97 : vector<8x128xf32>
    %99 = vector.extract_strided_slice %84 {offsets = [0, 384], sizes = [8, 128], strides = [1, 1]} : vector<8x512xf32> to vector<8x128xf32>
    %100 = arith.negf %99 : vector<8x128xf32>
    %101 = math.exp %100 : vector<8x128xf32>
    %cst_34 = arith.constant 1.000000e+00 : f32
    %102 = vector.broadcast %cst_34 : f32 to vector<8x128xf32>
    %103 = arith.addf %102, %101 : vector<8x128xf32>
    %104 = arith.divf %102, %103 : vector<8x128xf32>
    %105 = arith.mulf %96, %73 : vector<8x128xf32>
    %106 = arith.mulf %90, %98 : vector<8x128xf32>
    %107 = arith.addf %105, %106 : vector<8x128xf32>
    %108 = math.tanh %107 : vector<8x128xf32>
    %109 = arith.mulf %104, %108 : vector<8x128xf32>
    %110 = arith.index_cast %c2_i32 : i32 to index
    %c0_35 = arith.constant 0 : index
    %c0_36 = arith.constant 0 : index
    %111 = vector.load %arg9[%110, %c0_35, %c0_36] : memref<8x8x128xf32, #tpu.memory_space<vmem>>, vector<1x8x128xf32>
    %112 = vector.shape_cast %111 : vector<1x8x128xf32> to vector<8x128xf32>
    %113 = vector.shape_cast %109 : vector<8x128xf32> to vector<1x8x128xf32>
    tpu.vector_store %arg9[%110, %c0_35, %c0_36], %113 {strides = array<i32>} : memref<8x8x128xf32, #tpu.memory_space<vmem>>, vector<1x8x128xf32>,
    %c3_i32 = arith.constant 3 : i32
    %114 = arith.index_cast %c3_i32 : i32 to index
    %c0_37 = arith.constant 0 : index
    %c0_38 = arith.constant 0 : index
    %115 = vector.load %arg8[%114, %c0_37, %c0_38] : memref<8x8x512xf32, #tpu.memory_space<vmem>>, vector<1x8x512xf32>
    %116 = vector.shape_cast %115 : vector<1x8x512xf32> to vector<8x512xf32>
    %cst_39 = arith.constant dense<0.000000e+00> : vector<8x512xf32>
    %117 = tpu.matmul %109, %9, %cst_39 {dimension_numbers = #tpu.dot_dimension_numbers<[1], [0], [0], [1], [0, 0, 1, 1], [], []>} : vector<8x128xf32>, vector<128x512xf32>, vector<8x512xf32> -> vector<8x512xf32>
    %118 = arith.addf %116, %117 : vector<8x512xf32>
    %119 = vector.extract_strided_slice %118 {offsets = [0, 0], sizes = [8, 128], strides = [1, 1]} : vector<8x512xf32> to vector<8x128xf32>
    %120 = arith.negf %119 : vector<8x128xf32>
    %121 = math.exp %120 : vector<8x128xf32>
    %cst_40 = arith.constant 1.000000e+00 : f32
    %122 = vector.broadcast %cst_40 : f32 to vector<8x128xf32>
    %123 = arith.addf %122, %121 : vector<8x128xf32>
    %124 = arith.divf %122, %123 : vector<8x128xf32>
    %125 = vector.extract_strided_slice %118 {offsets = [0, 128], sizes = [8, 128], strides = [1, 1]} : vector<8x512xf32> to vector<8x128xf32>
    %126 = arith.negf %125 : vector<8x128xf32>
    %127 = math.exp %126 : vector<8x128xf32>
    %cst_41 = arith.constant 1.000000e+00 : f32
    %128 = vector.broadcast %cst_41 : f32 to vector<8x128xf32>
    %129 = arith.addf %128, %127 : vector<8x128xf32>
    %130 = arith.divf %128, %129 : vector<8x128xf32>
    %131 = vector.extract_strided_slice %118 {offsets = [0, 256], sizes = [8, 128], strides = [1, 1]} : vector<8x512xf32> to vector<8x128xf32>
    %132 = math.tanh %131 : vector<8x128xf32>
    %133 = vector.extract_strided_slice %118 {offsets = [0, 384], sizes = [8, 128], strides = [1, 1]} : vector<8x512xf32> to vector<8x128xf32>
    %134 = arith.negf %133 : vector<8x128xf32>
    %135 = math.exp %134 : vector<8x128xf32>
    %cst_42 = arith.constant 1.000000e+00 : f32
    %136 = vector.broadcast %cst_42 : f32 to vector<8x128xf32>
    %137 = arith.addf %136, %135 : vector<8x128xf32>
    %138 = arith.divf %136, %137 : vector<8x128xf32>
    %139 = arith.mulf %130, %107 : vector<8x128xf32>
    %140 = arith.mulf %124, %132 : vector<8x128xf32>
    %141 = arith.addf %139, %140 : vector<8x128xf32>
    %142 = math.tanh %141 : vector<8x128xf32>
    %143 = arith.mulf %138, %142 : vector<8x128xf32>
    %144 = arith.index_cast %c3_i32 : i32 to index
    %c0_43 = arith.constant 0 : index
    %c0_44 = arith.constant 0 : index
    %145 = vector.load %arg9[%144, %c0_43, %c0_44] : memref<8x8x128xf32, #tpu.memory_space<vmem>>, vector<1x8x128xf32>
    %146 = vector.shape_cast %145 : vector<1x8x128xf32> to vector<8x128xf32>
    %147 = vector.shape_cast %143 : vector<8x128xf32> to vector<1x8x128xf32>
    tpu.vector_store %arg9[%144, %c0_43, %c0_44], %147 {strides = array<i32>} : memref<8x8x128xf32, #tpu.memory_space<vmem>>, vector<1x8x128xf32>,
    %c4_i32 = arith.constant 4 : i32
    %148 = arith.index_cast %c4_i32 : i32 to index
    %c0_45 = arith.constant 0 : index
    %c0_46 = arith.constant 0 : index
    %149 = vector.load %arg8[%148, %c0_45, %c0_46] : memref<8x8x512xf32, #tpu.memory_space<vmem>>, vector<1x8x512xf32>
    %150 = vector.shape_cast %149 : vector<1x8x512xf32> to vector<8x512xf32>
    %cst_47 = arith.constant dense<0.000000e+00> : vector<8x512xf32>
    %151 = tpu.matmul %143, %9, %cst_47 {dimension_numbers = #tpu.dot_dimension_numbers<[1], [0], [0], [1], [0, 0, 1, 1], [], []>} : vector<8x128xf32>, vector<128x512xf32>, vector<8x512xf32> -> vector<8x512xf32>
    %152 = arith.addf %150, %151 : vector<8x512xf32>
    %153 = vector.extract_strided_slice %152 {offsets = [0, 0], sizes = [8, 128], strides = [1, 1]} : vector<8x512xf32> to vector<8x128xf32>
    %154 = arith.negf %153 : vector<8x128xf32>
    %155 = math.exp %154 : vector<8x128xf32>
    %cst_48 = arith.constant 1.000000e+00 : f32
    %156 = vector.broadcast %cst_48 : f32 to vector<8x128xf32>
    %157 = arith.addf %156, %155 : vector<8x128xf32>
    %158 = arith.divf %156, %157 : vector<8x128xf32>
    %159 = vector.extract_strided_slice %152 {offsets = [0, 128], sizes = [8, 128], strides = [1, 1]} : vector<8x512xf32> to vector<8x128xf32>
    %160 = arith.negf %159 : vector<8x128xf32>
    %161 = math.exp %160 : vector<8x128xf32>
    %cst_49 = arith.constant 1.000000e+00 : f32
    %162 = vector.broadcast %cst_49 : f32 to vector<8x128xf32>
    %163 = arith.addf %162, %161 : vector<8x128xf32>
    %164 = arith.divf %162, %163 : vector<8x128xf32>
    %165 = vector.extract_strided_slice %152 {offsets = [0, 256], sizes = [8, 128], strides = [1, 1]} : vector<8x512xf32> to vector<8x128xf32>
    %166 = math.tanh %165 : vector<8x128xf32>
    %167 = vector.extract_strided_slice %152 {offsets = [0, 384], sizes = [8, 128], strides = [1, 1]} : vector<8x512xf32> to vector<8x128xf32>
    %168 = arith.negf %167 : vector<8x128xf32>
    %169 = math.exp %168 : vector<8x128xf32>
    %cst_50 = arith.constant 1.000000e+00 : f32
    %170 = vector.broadcast %cst_50 : f32 to vector<8x128xf32>
    %171 = arith.addf %170, %169 : vector<8x128xf32>
    %172 = arith.divf %170, %171 : vector<8x128xf32>
    %173 = arith.mulf %164, %141 : vector<8x128xf32>
    %174 = arith.mulf %158, %166 : vector<8x128xf32>
    %175 = arith.addf %173, %174 : vector<8x128xf32>
    %176 = math.tanh %175 : vector<8x128xf32>
    %177 = arith.mulf %172, %176 : vector<8x128xf32>
    %178 = arith.index_cast %c4_i32 : i32 to index
    %c0_51 = arith.constant 0 : index
    %c0_52 = arith.constant 0 : index
    %179 = vector.load %arg9[%178, %c0_51, %c0_52] : memref<8x8x128xf32, #tpu.memory_space<vmem>>, vector<1x8x128xf32>
    %180 = vector.shape_cast %179 : vector<1x8x128xf32> to vector<8x128xf32>
    %181 = vector.shape_cast %177 : vector<8x128xf32> to vector<1x8x128xf32>
    tpu.vector_store %arg9[%178, %c0_51, %c0_52], %181 {strides = array<i32>} : memref<8x8x128xf32, #tpu.memory_space<vmem>>, vector<1x8x128xf32>,
    %c5_i32 = arith.constant 5 : i32
    %182 = arith.index_cast %c5_i32 : i32 to index
    %c0_53 = arith.constant 0 : index
    %c0_54 = arith.constant 0 : index
    %183 = vector.load %arg8[%182, %c0_53, %c0_54] : memref<8x8x512xf32, #tpu.memory_space<vmem>>, vector<1x8x512xf32>
    %184 = vector.shape_cast %183 : vector<1x8x512xf32> to vector<8x512xf32>
    %cst_55 = arith.constant dense<0.000000e+00> : vector<8x512xf32>
    %185 = tpu.matmul %177, %9, %cst_55 {dimension_numbers = #tpu.dot_dimension_numbers<[1], [0], [0], [1], [0, 0, 1, 1], [], []>} : vector<8x128xf32>, vector<128x512xf32>, vector<8x512xf32> -> vector<8x512xf32>
    %186 = arith.addf %184, %185 : vector<8x512xf32>
    %187 = vector.extract_strided_slice %186 {offsets = [0, 0], sizes = [8, 128], strides = [1, 1]} : vector<8x512xf32> to vector<8x128xf32>
    %188 = arith.negf %187 : vector<8x128xf32>
    %189 = math.exp %188 : vector<8x128xf32>
    %cst_56 = arith.constant 1.000000e+00 : f32
    %190 = vector.broadcast %cst_56 : f32 to vector<8x128xf32>
    %191 = arith.addf %190, %189 : vector<8x128xf32>
    %192 = arith.divf %190, %191 : vector<8x128xf32>
    %193 = vector.extract_strided_slice %186 {offsets = [0, 128], sizes = [8, 128], strides = [1, 1]} : vector<8x512xf32> to vector<8x128xf32>
    %194 = arith.negf %193 : vector<8x128xf32>
    %195 = math.exp %194 : vector<8x128xf32>
    %cst_57 = arith.constant 1.000000e+00 : f32
    %196 = vector.broadcast %cst_57 : f32 to vector<8x128xf32>
    %197 = arith.addf %196, %195 : vector<8x128xf32>
    %198 = arith.divf %196, %197 : vector<8x128xf32>
    %199 = vector.extract_strided_slice %186 {offsets = [0, 256], sizes = [8, 128], strides = [1, 1]} : vector<8x512xf32> to vector<8x128xf32>
    %200 = math.tanh %199 : vector<8x128xf32>
    %201 = vector.extract_strided_slice %186 {offsets = [0, 384], sizes = [8, 128], strides = [1, 1]} : vector<8x512xf32> to vector<8x128xf32>
    %202 = arith.negf %201 : vector<8x128xf32>
    %203 = math.exp %202 : vector<8x128xf32>
    %cst_58 = arith.constant 1.000000e+00 : f32
    %204 = vector.broadcast %cst_58 : f32 to vector<8x128xf32>
    %205 = arith.addf %204, %203 : vector<8x128xf32>
    %206 = arith.divf %204, %205 : vector<8x128xf32>
    %207 = arith.mulf %198, %175 : vector<8x128xf32>
    %208 = arith.mulf %192, %200 : vector<8x128xf32>
    %209 = arith.addf %207, %208 : vector<8x128xf32>
    %210 = math.tanh %209 : vector<8x128xf32>
    %211 = arith.mulf %206, %210 : vector<8x128xf32>
    %212 = arith.index_cast %c5_i32 : i32 to index
    %c0_59 = arith.constant 0 : index
    %c0_60 = arith.constant 0 : index
    %213 = vector.load %arg9[%212, %c0_59, %c0_60] : memref<8x8x128xf32, #tpu.memory_space<vmem>>, vector<1x8x128xf32>
    %214 = vector.shape_cast %213 : vector<1x8x128xf32> to vector<8x128xf32>
    %215 = vector.shape_cast %211 : vector<8x128xf32> to vector<1x8x128xf32>
    tpu.vector_store %arg9[%212, %c0_59, %c0_60], %215 {strides = array<i32>} : memref<8x8x128xf32, #tpu.memory_space<vmem>>, vector<1x8x128xf32>,
    %c6_i32 = arith.constant 6 : i32
    %216 = arith.index_cast %c6_i32 : i32 to index
    %c0_61 = arith.constant 0 : index
    %c0_62 = arith.constant 0 : index
    %217 = vector.load %arg8[%216, %c0_61, %c0_62] : memref<8x8x512xf32, #tpu.memory_space<vmem>>, vector<1x8x512xf32>
    %218 = vector.shape_cast %217 : vector<1x8x512xf32> to vector<8x512xf32>
    %cst_63 = arith.constant dense<0.000000e+00> : vector<8x512xf32>
    %219 = tpu.matmul %211, %9, %cst_63 {dimension_numbers = #tpu.dot_dimension_numbers<[1], [0], [0], [1], [0, 0, 1, 1], [], []>} : vector<8x128xf32>, vector<128x512xf32>, vector<8x512xf32> -> vector<8x512xf32>
    %220 = arith.addf %218, %219 : vector<8x512xf32>
    %221 = vector.extract_strided_slice %220 {offsets = [0, 0], sizes = [8, 128], strides = [1, 1]} : vector<8x512xf32> to vector<8x128xf32>
    %222 = arith.negf %221 : vector<8x128xf32>
    %223 = math.exp %222 : vector<8x128xf32>
    %cst_64 = arith.constant 1.000000e+00 : f32
    %224 = vector.broadcast %cst_64 : f32 to vector<8x128xf32>
    %225 = arith.addf %224, %223 : vector<8x128xf32>
    %226 = arith.divf %224, %225 : vector<8x128xf32>
    %227 = vector.extract_strided_slice %220 {offsets = [0, 128], sizes = [8, 128], strides = [1, 1]} : vector<8x512xf32> to vector<8x128xf32>
    %228 = arith.negf %227 : vector<8x128xf32>
    %229 = math.exp %228 : vector<8x128xf32>
    %cst_65 = arith.constant 1.000000e+00 : f32
    %230 = vector.broadcast %cst_65 : f32 to vector<8x128xf32>
    %231 = arith.addf %230, %229 : vector<8x128xf32>
    %232 = arith.divf %230, %231 : vector<8x128xf32>
    %233 = vector.extract_strided_slice %220 {offsets = [0, 256], sizes = [8, 128], strides = [1, 1]} : vector<8x512xf32> to vector<8x128xf32>
    %234 = math.tanh %233 : vector<8x128xf32>
    %235 = vector.extract_strided_slice %220 {offsets = [0, 384], sizes = [8, 128], strides = [1, 1]} : vector<8x512xf32> to vector<8x128xf32>
    %236 = arith.negf %235 : vector<8x128xf32>
    %237 = math.exp %236 : vector<8x128xf32>
    %cst_66 = arith.constant 1.000000e+00 : f32
    %238 = vector.broadcast %cst_66 : f32 to vector<8x128xf32>
    %239 = arith.addf %238, %237 : vector<8x128xf32>
    %240 = arith.divf %238, %239 : vector<8x128xf32>
    %241 = arith.mulf %232, %209 : vector<8x128xf32>
    %242 = arith.mulf %226, %234 : vector<8x128xf32>
    %243 = arith.addf %241, %242 : vector<8x128xf32>
    %244 = math.tanh %243 : vector<8x128xf32>
    %245 = arith.mulf %240, %244 : vector<8x128xf32>
    %246 = arith.index_cast %c6_i32 : i32 to index
    %c0_67 = arith.constant 0 : index
    %c0_68 = arith.constant 0 : index
    %247 = vector.load %arg9[%246, %c0_67, %c0_68] : memref<8x8x128xf32, #tpu.memory_space<vmem>>, vector<1x8x128xf32>
    %248 = vector.shape_cast %247 : vector<1x8x128xf32> to vector<8x128xf32>
    %249 = vector.shape_cast %245 : vector<8x128xf32> to vector<1x8x128xf32>
    tpu.vector_store %arg9[%246, %c0_67, %c0_68], %249 {strides = array<i32>} : memref<8x8x128xf32, #tpu.memory_space<vmem>>, vector<1x8x128xf32>,
    %c7_i32 = arith.constant 7 : i32
    %250 = arith.index_cast %c7_i32 : i32 to index
    %c0_69 = arith.constant 0 : index
    %c0_70 = arith.constant 0 : index
    %251 = vector.load %arg8[%250, %c0_69, %c0_70] : memref<8x8x512xf32, #tpu.memory_space<vmem>>, vector<1x8x512xf32>
    %252 = vector.shape_cast %251 : vector<1x8x512xf32> to vector<8x512xf32>
    %cst_71 = arith.constant dense<0.000000e+00> : vector<8x512xf32>
    %253 = tpu.matmul %245, %9, %cst_71 {dimension_numbers = #tpu.dot_dimension_numbers<[1], [0], [0], [1], [0, 0, 1, 1], [], []>} : vector<8x128xf32>, vector<128x512xf32>, vector<8x512xf32> -> vector<8x512xf32>
    %254 = arith.addf %252, %253 : vector<8x512xf32>
    %255 = vector.extract_strided_slice %254 {offsets = [0, 0], sizes = [8, 128], strides = [1, 1]} : vector<8x512xf32> to vector<8x128xf32>
    %256 = arith.negf %255 : vector<8x128xf32>
    %257 = math.exp %256 : vector<8x128xf32>
    %cst_72 = arith.constant 1.000000e+00 : f32
    %258 = vector.broadcast %cst_72 : f32 to vector<8x128xf32>
    %259 = arith.addf %258, %257 : vector<8x128xf32>
    %260 = arith.divf %258, %259 : vector<8x128xf32>
    %261 = vector.extract_strided_slice %254 {offsets = [0, 128], sizes = [8, 128], strides = [1, 1]} : vector<8x512xf32> to vector<8x128xf32>
    %262 = arith.negf %261 : vector<8x128xf32>
    %263 = math.exp %262 : vector<8x128xf32>
    %cst_73 = arith.constant 1.000000e+00 : f32
    %264 = vector.broadcast %cst_73 : f32 to vector<8x128xf32>
    %265 = arith.addf %264, %263 : vector<8x128xf32>
    %266 = arith.divf %264, %265 : vector<8x128xf32>
    %267 = vector.extract_strided_slice %254 {offsets = [0, 256], sizes = [8, 128], strides = [1, 1]} : vector<8x512xf32> to vector<8x128xf32>
    %268 = math.tanh %267 : vector<8x128xf32>
    %269 = vector.extract_strided_slice %254 {offsets = [0, 384], sizes = [8, 128], strides = [1, 1]} : vector<8x512xf32> to vector<8x128xf32>
    %270 = arith.negf %269 : vector<8x128xf32>
    %271 = math.exp %270 : vector<8x128xf32>
    %cst_74 = arith.constant 1.000000e+00 : f32
    %272 = vector.broadcast %cst_74 : f32 to vector<8x128xf32>
    %273 = arith.addf %272, %271 : vector<8x128xf32>
    %274 = arith.divf %272, %273 : vector<8x128xf32>
    %275 = arith.mulf %266, %243 : vector<8x128xf32>
    %276 = arith.mulf %260, %268 : vector<8x128xf32>
    %277 = arith.addf %275, %276 : vector<8x128xf32>
    %278 = math.tanh %277 : vector<8x128xf32>
    %279 = arith.mulf %274, %278 : vector<8x128xf32>
    %280 = arith.index_cast %c7_i32 : i32 to index
    %c0_75 = arith.constant 0 : index
    %c0_76 = arith.constant 0 : index
    %281 = vector.load %arg9[%280, %c0_75, %c0_76] : memref<8x8x128xf32, #tpu.memory_space<vmem>>, vector<1x8x128xf32>
    %282 = vector.shape_cast %281 : vector<1x8x128xf32> to vector<8x128xf32>
    %283 = vector.shape_cast %279 : vector<8x128xf32> to vector<1x8x128xf32>
    tpu.vector_store %arg9[%280, %c0_75, %c0_76], %283 {strides = array<i32>} : memref<8x8x128xf32, #tpu.memory_space<vmem>>, vector<1x8x128xf32>,
    %c8_i32 = arith.constant 8 : i32
    %c0_77 = arith.constant 0 : index
    %c0_78 = arith.constant 0 : index
    %c0_79 = arith.constant 0 : index
    %284 = vector.load %arg9[%c0_77, %c0_78, %c0_79] : memref<8x8x128xf32, #tpu.memory_space<vmem>>, vector<8x8x128xf32>
    %285 = vector.shape_cast %284 : vector<8x8x128xf32> to vector<64x128xf32>
    %c0_80 = arith.constant 0 : index
    %c0_81 = arith.constant 0 : index
    %286 = vector.load %arg4[%c0_80, %c0_81] : memref<128x24xf32, #tpu.memory_space<vmem>>, vector<128x24xf32>
    %cst_82 = arith.constant dense<0.000000e+00> : vector<64x24xf32>
    %287 = tpu.matmul %285, %286, %cst_82 {dimension_numbers = #tpu.dot_dimension_numbers<[1], [0], [0], [1], [0, 0, 1, 1], [], []>} : vector<64x128xf32>, vector<128x24xf32>, vector<64x24xf32> -> vector<64x24xf32>
    %c0_83 = arith.constant 0 : index
    %c0_84 = arith.constant 0 : index
    %288 = vector.load %arg5[%c0_83, %c0_84] : memref<1x24xf32, #tpu.memory_space<vmem>>, vector<1x24xf32>
    %289 = vector.broadcast %288 : vector<1x24xf32> to vector<64x24xf32>
    %290 = arith.addf %287, %289 : vector<64x24xf32>
    %291 = vector.extract_strided_slice %290 {offsets = [0, 0], sizes = [64, 16], strides = [1, 1]} : vector<64x24xf32> to vector<64x16xf32>
    %cst_85 = arith.constant dense<0xFF800000> : vector<64xf32>
    %292 = vector.multi_reduction <maximumf>, %291, %cst_85 [1] : vector<64x16xf32> to vector<64xf32>
    %293 = vector.shape_cast %292 : vector<64xf32> to vector<64x1xf32>
    %294 = vector.broadcast %293 : vector<64x1xf32> to vector<64x16xf32>
    %295 = arith.subf %291, %294 : vector<64x16xf32>
    %296 = math.exp %295 : vector<64x16xf32>
    %cst_86 = arith.constant dense<0.000000e+00> : vector<64xf32>
    %297 = vector.multi_reduction <add>, %296, %cst_86 [1] : vector<64x16xf32> to vector<64xf32>
    %298 = vector.shape_cast %297 : vector<64xf32> to vector<64x1xf32>
    %299 = vector.broadcast %293 : vector<64x1xf32> to vector<64x16xf32>
    %300 = arith.subf %291, %299 : vector<64x16xf32>
    %301 = math.log %298 : vector<64x1xf32>
    %302 = vector.broadcast %301 : vector<64x1xf32> to vector<64x16xf32>
    %303 = arith.subf %300, %302 : vector<64x16xf32>
    %304 = vector.shape_cast %303 : vector<64x16xf32> to vector<8x8x16xf32>
    %c0_87 = arith.constant 0 : index
    %c0_88 = arith.constant 0 : index
    %c0_89 = arith.constant 0 : index
    %305 = vector.load %arg6[%c0_87, %c0_88, %c0_89] : memref<8x8x16xf32, #tpu.memory_space<vmem>>, vector<8x8x16xf32>
    tpu.vector_store %arg6[%c0_87, %c0_88, %c0_89], %304 {strides = array<i32>} : memref<8x8x16xf32, #tpu.memory_space<vmem>>, vector<8x8x16xf32>,
    %306 = vector.extract_strided_slice %290 {offsets = [0, 16], sizes = [64, 8], strides = [1, 1]} : vector<64x24xf32> to vector<64x8xf32>
    %cst_90 = arith.constant dense<0xFF800000> : vector<64xf32>
    %307 = vector.multi_reduction <maximumf>, %306, %cst_90 [1] : vector<64x8xf32> to vector<64xf32>
    %308 = vector.shape_cast %307 : vector<64xf32> to vector<64x1xf32>
    %309 = vector.broadcast %308 : vector<64x1xf32> to vector<64x8xf32>
    %310 = arith.subf %306, %309 : vector<64x8xf32>
    %311 = math.exp %310 : vector<64x8xf32>
    %cst_91 = arith.constant dense<0.000000e+00> : vector<64xf32>
    %312 = vector.multi_reduction <add>, %311, %cst_91 [1] : vector<64x8xf32> to vector<64xf32>
    %313 = vector.shape_cast %312 : vector<64xf32> to vector<64x1xf32>
    %314 = vector.broadcast %308 : vector<64x1xf32> to vector<64x8xf32>
    %315 = arith.subf %306, %314 : vector<64x8xf32>
    %316 = math.log %313 : vector<64x1xf32>
    %317 = vector.broadcast %316 : vector<64x1xf32> to vector<64x8xf32>
    %318 = arith.subf %315, %317 : vector<64x8xf32>
    %319 = vector.shape_cast %318 : vector<64x8xf32> to vector<8x8x8xf32>
    %c0_92 = arith.constant 0 : index
    %c0_93 = arith.constant 0 : index
    %c0_94 = arith.constant 0 : index
    %320 = vector.load %arg7[%c0_92, %c0_93, %c0_94] : memref<8x8x8xf32, #tpu.memory_space<vmem>>, vector<8x8x8xf32>
    tpu.vector_store %arg7[%c0_92, %c0_93, %c0_94], %319 {strides = array<i32>} : memref<8x8x8xf32, #tpu.memory_space<vmem>>, vector<8x8x8xf32>,
    return
  }
}

</mosaic_0001>

<bundles_post_ra>
// kernel: jazz_forward.1
= control target key start
LH: loop header
LB: loop body
LE: loop exit
PB: predicated region body
PF: predicated region fallthrough
CT: control target
= control target key end

     0   :  { %13 = vsyncpa [#allocation5], 0  ;;  %s4322_s0 = inlined_call_operand.hbm [shape: f32[8,8,32], index: 0, kind: input, shape index: {}]   ;;  %s4323_s1 = inlined_call_operand.hbm [shape: f32[32,512], index: 1, kind: input, shape index: {}]   ;;  %s4324_s2 = inlined_call_operand.hbm [shape: f32[128,512], index: 2, kind: input, shape index: {}]   ;;  %s4325_s3 = inlined_call_operand.hbm [shape: f32[1,512], index: 3, kind: input, shape index: {}]   ;;  %s4326_s4 = inlined_call_operand.hbm [shape: f32[128,24], index: 4, kind: input, shape index: {}]   ;;  %s4327_s5 = inlined_call_operand.hbm [shape: f32[1,24], index: 5, kind: input, shape index: {}]   ;;  %s4328_s6 = inlined_call_operand.hbm [shape: f32[8,8,16], index: 6, kind: output, shape index: {0}]   ;;  %s4329_s7 = inlined_call_operand.hbm [shape: f32[8,8,8], index: 7, kind: output, shape index: {1}]  }
   0x1   :  { %14 = vsyncpa [#allocation8], 0 }
   0x2   :  { %15 = vsyncpa [#allocation11], 0 }
   0x3   :  { %16 = vsyncpa [#allocation14], 0 }
   0x4   :  { %17 = vsyncpa [#allocation6], 0 }
   0x5   :  { %18 = vsyncpa [#allocation17], 0  ;;  %s3486_s24 = smov [#allocation7]   ;;  %s3298_s28 = scalar_lea.hbm %s4323_s1, 2048 }
   0x6   :  { %s36_s25 = sshll.u32 %s3486_s24, 4  ;;  %p3299_p0 = scmp.ne.s32.totalorder %s4323_s1, %s3298_s28  ;;  %s37_s25 = int_to_ptr.vmem [resolvable:$true] %s36_s25 }
   0x7   :  { %p3302_p1 = scmp.lt.u32.totalorder %s3298_s28, %s4323_s1 }
   0x9   :  { %p3304_p2 = pnand %p3302_p1, %p3299_p0 }
   0xb   :  { %3307 = shalt.err (!%p3304_p2)
}
   0xc   :  { %s3308_s10 = scalar_lea.vmem %s37_s25, 2048  ;;  %p3313_p4 = scmp.lt.s32.totalorder %s37_s25, %s37_s25 }
   0xd   :  { %p3309_p3 = scmp.ne.s32.totalorder %s37_s25, %s3308_s10  ;;  %p3314_p5 = scmp.lt.s32.totalorder %s3308_s10, %s3308_s10 }
   0xf   :  { %p3315_p6 = por %p3314_p5, %p3313_p4 }
  0x11   :  { %p3316_p7 = pnand %p3315_p6, %p3309_p3 }
  0x13   :  { %3319 = shalt.err (!%p3316_p7)
}
  0x14   :  { %s3487_s11 = smov 512   ;;  %s3488_s12 = smov 32  }
  0x15   :  { %42 = dma.hbm_to_vmem [thread:$0]  %s4323_s1, 2048, %s37_s25, [#allocation8], %s3487_s11, %s3487_s11, %s3488_s12  }
  0x16   :  { %s3489_s15 = smov [#allocation10]   ;;  %s3490_s17 = smov [#allocation4]  }
  0x17   :  { %s61_s16 = sshll.u32 %s3489_s15, 4  ;;  %s24_s18 = sshll.u32 %s3490_s17, 4  ;;  %s62_s16 = int_to_ptr.vmem [resolvable:$true] %s61_s16  ;;  %s25_s18 = int_to_ptr.vmem [resolvable:$true] %s24_s18 }
  0x18   :  { %s3320_s21 = scalar_lea.hbm %s4325_s3, 64 }
  0x19   :  { %p3321_p8 = scmp.ne.s32.totalorder %s4325_s3, %s3320_s21  ;;  %p3324_p9 = scmp.lt.u32.totalorder %s3320_s21, %s4325_s3 }
  0x1b   :  { %p3326_p10 = pnand %p3324_p9, %p3321_p8 }
  0x1d   :  { %3329 = shalt.err (!%p3326_p10)
}
  0x1e   :  { %s3330_s1 = scalar_lea.vmem %s62_s16, 64  ;;  %p3335_p12 = scmp.lt.s32.totalorder %s62_s16, %s62_s16 }
  0x1f   :  { %p3331_p11 = scmp.ne.s32.totalorder %s62_s16, %s3330_s1  ;;  %p3336_p13 = scmp.lt.s32.totalorder %s3330_s1, %s3330_s1 }
  0x21   :  { %p3337_p0 = por %p3336_p13, %p3335_p12 }
  0x23   :  { %p3338_p1 = pnand %p3337_p0, %p3331_p11 }
  0x25   :  { %3341 = shalt.err (!%p3338_p1)
}
  0x26   :  { %64 = dma.hbm_to_vmem [thread:$0]  %s4325_s3, 64, %s62_s16, [#allocation11]  }
  0x27   :  { %s3342_s30 = scalar_lea.hbm %s4322_s0, 1024 }
  0x28   :  { %p3343_p2 = scmp.ne.s32.totalorder %s4322_s0, %s3342_s30  ;;  %p3346_p3 = scmp.lt.u32.totalorder %s3342_s30, %s4322_s0 }
  0x2a   :  { %p3348_p4 = pnand %p3346_p3, %p3343_p2 }
  0x2c   :  { %3351 = shalt.err (!%p3348_p4)
}
  0x2d   :  { %s3352_s14 = scalar_lea.vmem %s25_s18, 1024  ;;  %p3357_p6 = scmp.lt.s32.totalorder %s25_s18, %s25_s18 }
  0x2e   :  { %p3353_p5 = scmp.ne.s32.totalorder %s25_s18, %s3352_s14  ;;  %p3358_p7 = scmp.lt.s32.totalorder %s3352_s14, %s3352_s14 }
  0x30   :  { %p3359_p8 = por %p3358_p7, %p3357_p6 }
  0x32   :  { %p3360_p9 = pnand %p3359_p8, %p3353_p5 }
  0x34   :  { %3363 = shalt.err (!%p3360_p9)
}
  0x35   :  { %s3491_s3 = smov 128   ;;  %s3492_s15 = smov 8  }
  0x36   :  { %30 = dma.hbm_to_vmem [thread:$0]  %s4322_s0, 1024, %s25_s18, [#allocation5], %s3491_s3, %s3491_s3, %s3492_s15  }
  0x37   :  { %s3493_s19 = smov [#allocation9]   ;;  %s3494_s21 = smov [#allocation12]  }
  0x38   :  { %s48_s20 = sshll.u32 %s3493_s19, 4  ;;  %s70_s22 = sshll.u32 %s3494_s21, 4  ;;  %s49_s20 = int_to_ptr.vmem [resolvable:$true] %s48_s20  ;;  %s71_s22 = int_to_ptr.vmem [resolvable:$true] %s70_s22 }
  0x39   :  { %s3364_s26 = scalar_lea.hbm %s4324_s2, 8192 }
  0x3a   :  { %p3365_p10 = scmp.ne.s32.totalorder %s4324_s2, %s3364_s26  ;;  %p3368_p11 = scmp.lt.u32.totalorder %s3364_s26, %s4324_s2 }
  0x3c   :  { %p3370_p12 = pnand %p3368_p11, %p3365_p10 }
  0x3e   :  { %3373 = shalt.err (!%p3370_p12)
}
  0x3f   :  { %s3374_s0 = scalar_lea.vmem %s49_s20, 8192  ;;  %p3379_p0 = scmp.lt.s32.totalorder %s49_s20, %s49_s20 }
  0x40   :  { %p3375_p13 = scmp.ne.s32.totalorder %s49_s20, %s3374_s0  ;;  %p3380_p1 = scmp.lt.s32.totalorder %s3374_s0, %s3374_s0 }
  0x42   :  { %p3381_p2 = por %p3380_p1, %p3379_p0 }
  0x44   :  { %p3382_p3 = pnand %p3381_p2, %p3375_p13 }
  0x46   :  { %3385 = shalt.err (!%p3382_p3)
}
  0x47   :  { %54 = dma.hbm_to_vmem [thread:$0]  %s4324_s2, 8192, %s49_s20, [#allocation8], %s3487_s11, %s3487_s11, %s3488_s12  }
  0x48   :  { %s3386_s9 = scalar_lea.hbm %s4326_s4, 2048 }
  0x49   :  { %p3387_p4 = scmp.ne.s32.totalorder %s4326_s4, %s3386_s9  ;;  %p3390_p5 = scmp.lt.u32.totalorder %s3386_s9, %s4326_s4 }
  0x4b   :  { %p3392_p6 = pnand %p3390_p5, %p3387_p4 }
  0x4d   :  { %3395 = shalt.err (!%p3392_p6)
}
  0x4e   :  { %s3396_s17 = scalar_lea.vmem %s71_s22, 2048  ;;  %p3401_p8 = scmp.lt.s32.totalorder %s71_s22, %s71_s22 }
  0x4f   :  { %p3397_p7 = scmp.ne.s32.totalorder %s71_s22, %s3396_s17  ;;  %p3402_p9 = scmp.lt.s32.totalorder %s3396_s17, %s3396_s17 }
  0x51   :  { %p3403_p10 = por %p3402_p9, %p3401_p8 }
  0x53   :  { %p3404_p11 = pnand %p3403_p10, %p3397_p7 }
  0x55   :  { %3407 = shalt.err (!%p3404_p11)
}
  0x56   :  { %76 = dma.hbm_to_vmem [thread:$0]  %s4326_s4, 2048, %s71_s22, [#allocation11], %s3491_s3, %s3491_s3, %s3492_s15  }
  0x57   :  { %s3495_s12 = smov [#allocation13]   ;;  %s3408_s23 = scalar_lea.hbm %s4327_s5, 16 }
  0x58   :  { %s83_s19 = sshll.u32 %s3495_s12, 4  ;;  %p3409_p12 = scmp.ne.s32.totalorder %s4327_s5, %s3408_s23  ;;  %s84_s19 = int_to_ptr.vmem [resolvable:$true] %s83_s19 }
  0x59   :  { %p3412_p13 = scmp.lt.u32.totalorder %s3408_s23, %s4327_s5 }
  0x5b   :  { %p3414_p0 = pnand %p3412_p13, %p3409_p12 }
  0x5d   :  { %3417 = shalt.err (!%p3414_p0)
}
  0x5e   :  { %s3418_s27 = scalar_lea.vmem %s84_s19, 16  ;;  %s3422_s4 = scalar_lea.vmem %s84_s19, 32 }
  0x5f   :  { %p3419_p1 = scmp.ne.s32.totalorder %s84_s19, %s3418_s27  ;;  %p3423_p2 = scmp.lt.s32.totalorder %s84_s19, %s84_s19 }
  0x60   :  { %p3424_p3 = scmp.lt.s32.totalorder %s3422_s4, %s3418_s27 }
  0x62   :  { %p3425_p4 = por %p3424_p3, %p3423_p2 }
  0x64   :  { %p3426_p5 = pnand %p3425_p4, %p3419_p1 }
  0x66   :  { %3429 = shalt.err (!%p3426_p5)
}
  0x67   :  { %86 = dma.hbm_to_vmem [thread:$0]  %s4327_s5, 16, %s84_s19, [#allocation14]  }
  0x68   :  { %3474 = dma.done.wait [#allocation5], 1024  }
  0x69   :  { %3475 = vsyncadd [#allocation5], 4294966272 }
  0x6a   :  { %3476 = dma.done.wait [#allocation8], 10240  }
  0x6b   :  { %3477 = vsyncadd [#allocation8], 4294957056 }
  0x6c   :  { %3478 = dma.done.wait [#allocation11], 2112  }
  0x6d   :  { %3479 = vsyncadd [#allocation11], 4294965184 }
  0x6e   :  { %3480 = dma.done.wait [#allocation14], 16  }
  0x6f   :  { %3481 = vsyncadd [#allocation14], 4294967280  ;;  %v3496_v0 = vmov 0.0   ;;  %v116_v1 = vld [vmem:[#allocation7 + $0x18] sm:$0xff]  ;;  %v115_v3 = vld [vmem:[#allocation7 + $0x10] sm:$0xff]  ;;  %vm151_vm0 = vcmask 261120  }
  0x70   :  { %353 = vmatprep.mubr.f32.mxu1 %v3496_v0  ;;  %240 = vmatprep.mubr.f32.mxu0 %v3496_v0  ;;  %v120_v2 = vld [vmem:[#allocation7 + $0x38] sm:$0xff]  ;;  %v119_v5 = vld [vmem:[#allocation7 + $0x30] sm:$0xff]  ;;  %v435_v12 = vld [vmem:[#allocation9 + $0x8] sm:$0xff]  ;;  %vm2153_vm1 = vcmask 195712   ;;  %s3497_s5 = smov 112   ;;  %vm2048_vm2 = vcmask 130048  }
  0x71   :  { %v2476_v4 = vpack.c.bf16 %v120_v2, %v116_v1  ;;  %v124_v6 = vld [vmem:[#allocation7 + $0x58] sm:$0xff]  ;;  %v2478_v8 = vpack.c.bf16 %v119_v5, %v115_v3  ;;  %v123_v10 = vld [vmem:[#allocation7 + $0x50] sm:$0xff]  ;;  %v439_v13 = vld [vmem:[#allocation9 + $0x28] sm:$0xff]  ;;  %vm2234_vm3 = vcmask 64512   ;;  %s3498_s0 = smov [#allocation15]  }
  0x72   :  { %v128_v7 = vld [vmem:[#allocation7 + $0x78] sm:$0xff]  ;;  %v127_v11 = vld [vmem:[#allocation7 + $0x70] sm:$0xff]  ;;  %v3626_v15 = vpack.c.bf16 %v439_v13, %v435_v12  ;;  %v434_v16 = vld [vmem:[#allocation9] sm:$0xff]  ;;  %s2328_s18 = sshll.u32 %s3498_s0, 4  ;;  %s2329_s18 = int_to_ptr.vmem [resolvable:$true] %s2328_s18 }
  0x73   :  { %v2480_v9 = vpack.c.bf16 %v128_v7, %v124_v6  ;;  %2477 = vmatprep.subr.bf16.mxu1 %v2476_v4  ;;  %v2482_v14 = vpack.c.bf16 %v127_v11, %v123_v10  ;;  %v438_v17 = vld [vmem:[#allocation9 + $0x20] sm:$0xff]  ;;  %v443_v18 = vld [vmem:[#allocation9 + $0x48] sm:$0xff]  ;;  %v3648_v40 = vld [vmem:[#allocation4 + $0x10] sm:$0xff]  ;;  %s3430_s29 = scalar_lea.vmem %s2329_s18, 1024  ;;  %p3435_p7 = scmp.lt.s32.totalorder %s2329_s18, %s2329_s18 }
  0x74   :  { %2479 = vmatpush1.bf16.msra.mxu1 %v2478_v8  ;;  %v447_v19 = vld [vmem:[#allocation9 + $0x68] sm:$0xff]  ;;  %v3628_v20 = vld [vmem:[#allocation4] sm:$0xff]  ;;  %v3630_v21 = vpack.c.bf16 %v438_v17, %v434_v16  ;;  %v3661_v53 = vld [vmem:[#allocation4 + $0x18] sm:$0xff]  ;;  %p3431_p6 = scmp.ne.s32.totalorder %s2329_s18, %s3430_s29  ;;  %p3436_p8 = scmp.lt.s32.totalorder %s3430_s29, %s3430_s29 }
  0x75   :  { %2481 = vmatprep.subr.bf16.mxu1 %v2480_v9  ;;  %v3633_v22 = vpack.c.bf16 %v447_v19, %v443_v18  ;;  %v442_v23 = vld [vmem:[#allocation9 + $0x40] sm:$0xff]  ;;  %v451_v25 = vld [vmem:[#allocation9 + $0x88] sm:$0xff]  ;;  %v111_v11 = vld [vmem:[#allocation4 + $0x30] sm:$0xff] }
  0x76   :  { %v446_v24 = vld [vmem:[#allocation9 + $0x60] sm:$0xff]  ;;  %v455_v26 = vld [vmem:[#allocation9 + $0xa8] sm:$0xff]  ;;  %v437_v17 = vld [vmem:[#allocation9 + $0x18] sm:$0xff]  ;;  %p3437_p9 = por %p3436_p8, %p3435_p7 }
  0x77   :  { %v3637_v27 = vld [vmem:[#allocation4 + $0x8] sm:$0xff]  ;;  %v3641_v28 = vpack.c.bf16 %v446_v24, %v442_v23  ;;  %v450_v29 = vld [vmem:[#allocation9 + $0x80] sm:$0xff]  ;;  %v3644_v32 = vpack.c.bf16 %v455_v26, %v451_v25  ;;  %v441_v18 = vld [vmem:[#allocation9 + $0x38] sm:$0xff] }
  0x78   :  { %2483 = vmatpush1.bf16.msra.mxu1 %v2482_v14  ;;  %v454_v30 = vld [vmem:[#allocation9 + $0xa0] sm:$0xff]  ;;  %v114_v31 = vld [vmem:[#allocation7 + $0x8] sm:$0xff]  ;;  %v112_v19 = vld [vmem:[#allocation4 + $0x38] sm:$0xff]  ;;  %v3721_v23 = vpack.c.bf16 %v441_v18, %v437_v17  ;;  %p3438_p10 = pnand %p3437_p9, %p3431_p6 }
  0x79   :  { %2485 = vmatprep.subr.bf16.mxu1 %v3626_v15  ;;  %v118_v33 = vld [vmem:[#allocation7 + $0x28] sm:$0xff]  ;;  %v113_v34 = vld [vmem:[#allocation7] sm:$0xff]  ;;  %v3652_v42 = vpack.c.bf16 %v454_v30, %v450_v29  ;;  %v436_v24 = vld [vmem:[#allocation9 + $0x10] sm:$0xff] }
  0x7a   :  { %v117_v35 = vld [vmem:[#allocation7 + $0x20] sm:$0xff]  ;;  %v459_v36 = vld [vmem:[#allocation9 + $0xc8] sm:$0xff]  ;;  %v2468_v38 = vpack.c.bf16 %v118_v33, %v114_v31  ;;  %v440_v25 = vld [vmem:[#allocation9 + $0x30] sm:$0xff] }
  0x7b   :  { %2367 = vmatmul.mubr.msk.f32.vlgmr.msra.gmra.mrb[0].mxu1 %vm151_vm0, %v3628_v20  ;;  %v463_v37 = vld [vmem:[#allocation9 + $0xe8] sm:$0xff]  ;;  %v2470_v39 = vpack.c.bf16 %v117_v35, %v113_v34  ;;  %v121_v44 = vld [vmem:[#allocation7 + $0x40] sm:$0xff]  ;;  %v445_v26 = vld [vmem:[#allocation9 + $0x58] sm:$0xff]  ;;  %v3731_v29 = vpack.c.bf16 %v440_v25, %v436_v24 }
  0x7c   :  { %2487 = vmatpush1.bf16.msra.mxu1 %v3630_v21  ;;  %359 = vmatprep.mubr.f32.mxu1 %v3496_v0  ;;  %v122_v41 = vld [vmem:[#allocation7 + $0x48] sm:$0xff]  ;;  %v125_v45 = vld [vmem:[#allocation7 + $0x60] sm:$0xff]  ;;  %v3655_v46 = vpack.c.bf16 %v463_v37, %v459_v36  ;;  %v444_v31 = vld [vmem:[#allocation9 + $0x50] sm:$0xff] }
  0x7d   :  { %2489 = vmatprep.subr.bf16.mxu1 %v3633_v22  ;;  %v126_v43 = vld [vmem:[#allocation7 + $0x68] sm:$0xff]  ;;  %v458_v47 = vld [vmem:[#allocation9 + $0xc0] sm:$0xff]  ;;  %2469 = vmatprep.subr.bf16.mxu0 %v2468_v38  ;;  %v2474_v52 = vpack.c.bf16 %v125_v45, %v121_v44  ;;  %v448_v33 = vld [vmem:[#allocation9 + $0x70] sm:$0xff] }
  0x7e   :  { %v462_v48 = vld [vmem:[#allocation9 + $0xe0] sm:$0xff]  ;;  %v2472_v49 = vpack.c.bf16 %v126_v43, %v122_v41  ;;  %v467_v50 = vld [vmem:[#allocation9 + $0x108] sm:$0xff]  ;;  %2471 = vmatpush1.bf16.msra.mxu0 %v2470_v39  ;;  %v453_v34 = vld [vmem:[#allocation9 + $0x98] sm:$0xff]  ;;  %v3743_v36 = vpack.c.bf16 %v448_v33, %v444_v31 }
  0x7f   :  { %2368 = vmatmul.mubr.msk.f32.gmra.mrb[2].mxu1 %vm151_vm0, %v3637_v27  ;;  %v471_v51 = vld [vmem:[#allocation9 + $0x128] sm:$0xff]  ;;  %v3663_v54 = vpack.c.bf16 %v462_v48, %v458_v47  ;;  %v466_v56 = vld [vmem:[#allocation9 + $0x100] sm:$0xff]  ;;  %v457_v35 = vld [vmem:[#allocation9 + $0xb8] sm:$0xff] }
  0x80   :  { %2491 = vmatpush1.bf16.msra.mxu1 %v3641_v28  ;;  %365 = vmatprep.mubr.f32.mxu1 %v3496_v0  ;;  %v3666_v55 = vpack.c.bf16 %v471_v51, %v467_v50  ;;  %v470_v57 = vld [vmem:[#allocation9 + $0x120] sm:$0xff]  ;;  %v475_v58 = vld [vmem:[#allocation9 + $0x148] sm:$0xff]  ;;  %v3747_v37 = vpack.c.bf16 %v457_v35, %v453_v34  ;;  %v452_v38 = vld [vmem:[#allocation9 + $0x90] sm:$0xff] }
  0x81   :  { %2493 = vmatprep.subr.bf16.mxu1 %v3644_v32  ;;  %2473 = vmatprep.subr.bf16.mxu0 %v2472_v49  ;;  %v479_v59 = vld [vmem:[#allocation9 + $0x168] sm:$0xff]  ;;  %v3673_v60 = vld [vmem:[#allocation4 + $0x20] sm:$0xff]  ;;  %v3675_v61 = vpack.c.bf16 %v470_v57, %v466_v56  ;;  %v456_v39 = vld [vmem:[#allocation9 + $0xb0] sm:$0xff] }
  0x82   :  { %2475 = vmatpush1.bf16.msra.mxu0 %v2474_v52  ;;  %v3678_v62 = vpack.c.bf16 %v479_v59, %v475_v58  ;;  %v474_v63 = vld [vmem:[#allocation9 + $0x140] sm:$0xff]  ;;  %v483_v2 = vld [vmem:[#allocation9 + $0x188] sm:$0xff]  ;;  %v465_v41 = vld [vmem:[#allocation9 + $0xf8] sm:$0xff]  ;;  %v3755_v43 = vpack.c.bf16 %v456_v39, %v452_v38 }
  0x83   :  { %2369 = vmatmul.mubr.msk.f32.gmra.mrb[4].mxu1 %vm151_vm0, %v3648_v40  ;;  %2549 = vmatprep.subr.bf16.mxu0 %v3626_v15  ;;  %v478_v1 = vld [vmem:[#allocation9 + $0x160] sm:$0xff]  ;;  %v487_v3 = vld [vmem:[#allocation9 + $0x1a8] sm:$0xff]  ;;  %v460_v45 = vld [vmem:[#allocation9 + $0xd0] sm:$0xff] }
  0x84   :  { %2495 = vmatpush1.bf16.msra.mxu1 %v3652_v42  ;;  %371 = vmatprep.mubr.f32.mxu1 %v3496_v0  ;;  %v3689_v4 = vld [vmem:[#allocation4 + $0x28] sm:$0xff]  ;;  %v3691_v5 = vpack.c.bf16 %v478_v1, %v474_v63  ;;  %v3694_v6 = vpack.c.bf16 %v487_v3, %v483_v2  ;;  %v482_v7 = vld [vmem:[#allocation9 + $0x180] sm:$0xff]  ;;  %v464_v47 = vld [vmem:[#allocation9 + $0xf0] sm:$0xff] }
  0x85   :  { %2497 = vmatprep.subr.bf16.mxu1 %v3655_v46  ;;  %2359 = vmatmul.mubr.msk.f32.vlgmr.msra.gmra.mrb[0].mxu0 %vm151_vm0, %v3628_v20  ;;  %v486_v8 = vld [vmem:[#allocation9 + $0x1a0] sm:$0xff]  ;;  %v491_v9 = vld [vmem:[#allocation9 + $0x1c8] sm:$0xff]  ;;  %v469_v48 = vld [vmem:[#allocation9 + $0x118] sm:$0xff]  ;;  %v3765_v50 = vpack.c.bf16 %v464_v47, %v460_v45 }
  0x86   :  { %2551 = vmatpush1.bf16.msra.mxu0 %v3630_v21  ;;  %246 = vmatprep.mubr.f32.mxu0 %v3496_v0  ;;  %v495_v10 = vld [vmem:[#allocation9 + $0x1e8] sm:$0xff]  ;;  %v3705_v12 = vpack.c.bf16 %v486_v8, %v482_v7  ;;  %v490_v14 = vld [vmem:[#allocation9 + $0x1c0] sm:$0xff]  ;;  %v473_v49 = vld [vmem:[#allocation9 + $0x138] sm:$0xff] }
  0x87   :  { %2370 = vmatmul.mubr.msk.f32.gmra.mrb[6].mxu1 %vm151_vm0, %v3661_v53  ;;  %2553 = vmatprep.subr.bf16.mxu0 %v3633_v22  ;;  %v3708_v13 = vpack.c.bf16 %v495_v10, %v491_v9  ;;  %v494_v16 = vld [vmem:[#allocation9 + $0x1e0] sm:$0xff]  ;;  %v3768_v51 = vpack.c.bf16 %v473_v49, %v469_v48  ;;  %v468_v52 = vld [vmem:[#allocation9 + $0x110] sm:$0xff]  ;;  %v477_v56 = vld [vmem:[#allocation9 + $0x158] sm:$0xff] }
  0x88   :  { %2499 = vmatpush1.bf16.msra.mxu1 %v3663_v54  ;;  %377 = vmatprep.mubr.f32.mxu1 %v3496_v0  ;;  %v3718_v20 = vpack.c.bf16 %v494_v16, %v490_v14  ;;  %v481_v57 = vld [vmem:[#allocation9 + $0x178] sm:$0xff]  ;;  %v480_v63 = vld [vmem:[#allocation9 + $0x170] sm:$0xff]  ;;  %v129_v31 = vld [vmem:[#allocation10] sm:$0xf] }
  0x89   :  { %2501 = vmatprep.subr.bf16.mxu1 %v3666_v55  ;;  %2360 = vmatmul.mubr.msk.f32.gmra.mrb[2].mxu0 %vm151_vm0, %v3637_v27  ;;  %v449_v27 = vld [vmem:[#allocation9 + $0x78] sm:$0xff]  ;;  %v3778_v59 = vpack.c.bf16 %v481_v57, %v477_v56  ;;  %v484_v7 = vld [vmem:[#allocation9 + $0x190] sm:$0xff] }
  0x8a   :  { %2555 = vmatpush1.bf16.msra.mxu0 %v3641_v28  ;;  %252 = vmatprep.mubr.f32.mxu0 %v3496_v0  ;;  %v3734_v30 = vpack.c.bf16 %v449_v27, %v445_v26  ;;  %v485_v1 = vld [vmem:[#allocation9 + $0x198] sm:$0xff]  ;;  %v488_v8 = vld [vmem:[#allocation9 + $0x1b0] sm:$0xff] }
  0x8b   :  { %2371 = vmatmul.mubr.msk.f32.gmra.mrb[8].mxu1 %vm151_vm0, %v3673_v60  ;;  %2557 = vmatprep.subr.bf16.mxu0 %v3644_v32  ;;  %v489_v2 = vld [vmem:[#allocation9 + $0x1b8] sm:$0xff]  ;;  %v492_v16 = vld [vmem:[#allocation9 + $0x1d0] sm:$0xff] }
  0x8c   :  { %2503 = vmatpush1.bf16.msra.mxu1 %v3675_v61  ;;  %383 = vmatprep.mubr.f32.mxu1 %v3496_v0  ;;  %v493_v9 = vld [vmem:[#allocation9 + $0x1d8] sm:$0xff]  ;;  %v496_v17 = vld [vmem:[#allocation9 + $0x1f0] sm:$0xff] }
  0x8d   :  { %2505 = vmatprep.subr.bf16.mxu1 %v3678_v62  ;;  %2361 = vmatmul.mubr.msk.f32.gmra.mrb[4].mxu0 %vm151_vm0, %v3648_v40  ;;  %v461_v40 = vld [vmem:[#allocation9 + $0xd8] sm:$0xff]  ;;  %v3793_v18 = vpack.c.bf16 %v496_v17, %v492_v16 }
  0x8e   :  { %2559 = vmatpush1.bf16.msra.mxu0 %v3652_v42  ;;  %258 = vmatprep.mubr.f32.mxu0 %v3496_v0  ;;  %v3758_v44 = vpack.c.bf16 %v465_v41, %v461_v40  ;;  %v497_v10 = vld [vmem:[#allocation9 + $0x1f8] sm:$0xff] }
  0x8f   :  { %2372 = vmatmul.mubr.msk.f32.gmra.mrb[10].mxu1 %vm151_vm0, %v3689_v4  ;;  %2561 = vmatprep.subr.bf16.mxu0 %v3655_v46  ;;  %v3790_v14 = vpack.c.bf16 %v497_v10, %v493_v9 }
  0x90   :  { %2507 = vmatpush1.bf16.msra.mxu1 %v3691_v5  ;;  %389 = vmatprep.mubr.f32.mxu1 %v3496_v0 }
  0x91   :  { %2509 = vmatprep.subr.bf16.mxu1 %v3694_v6  ;;  %2362 = vmatmul.mubr.msk.f32.gmra.mrb[6].mxu0 %vm151_vm0, %v3661_v53  ;;  %v472_v53 = vld [vmem:[#allocation9 + $0x130] sm:$0xff] }
  0x92   :  { %2563 = vmatpush1.bf16.msra.mxu0 %v3663_v54  ;;  %264 = vmatprep.mubr.f32.mxu0 %v3496_v0  ;;  %v3775_v58 = vpack.c.bf16 %v472_v53, %v468_v52 }
  0x93   :  { %2373 = vmatmul.mubr.msk.f32.gmra.mrb[12].mxu1 %vm151_vm0, %v111_v11  ;;  %2565 = vmatprep.subr.bf16.mxu0 %v3666_v55 }
  0x94   :  { %2511 = vmatpush1.bf16.msra.mxu1 %v3705_v12  ;;  %395 = vmatprep.mubr.f32.mxu1 %v3496_v0 }
  0x95   :  { %2513 = vmatprep.subr.bf16.mxu1 %v3708_v13  ;;  %2363 = vmatmul.mubr.msk.f32.gmra.mrb[8].mxu0 %vm151_vm0, %v3673_v60  ;;  %v476_v60 = vld [vmem:[#allocation9 + $0x150] sm:$0xff] }
  0x96   :  { %2567 = vmatpush1.bf16.msra.mxu0 %v3675_v61  ;;  %270 = vmatprep.mubr.f32.mxu0 %v3496_v0  ;;  %v3781_v3 = vpack.c.bf16 %v480_v63, %v476_v60 }
  0x97   :  { %2374 = vmatmul.mubr.msk.f32.gmra.mrb[14].mxu1 %vm151_vm0, %v112_v19  ;;  %2569 = vmatprep.subr.bf16.mxu0 %v3678_v62 }
  0x98   :  { %2515 = vmatpush1.bf16.msra.mxu1 %v3718_v20  ;;  %566 = vmatprep.mubr.f32.mxu1 %v3496_v0 }
  0x99   :  { %2517 = vmatprep.subr.bf16.mxu1 %v3721_v23  ;;  %2364 = vmatmul.mubr.msk.f32.gmra.mrb[10].mxu0 %vm151_vm0, %v3689_v4  ;;  %v3784_v4 = vpack.c.bf16 %v489_v2, %v485_v1 }
  0x9a   :  { %2571 = vmatpush1.bf16.msra.mxu0 %v3691_v5  ;;  %276 = vmatprep.mubr.f32.mxu0 %v3496_v0 }
  0x9b   :  { %567 = vmatmul.mubr.f32.vlgmr.msra.gmra.mrb[16].mxu1 %v3496_v0  ;;  %2573 = vmatprep.subr.bf16.mxu0 %v3694_v6 }
  0x9c   :  { %2519 = vmatpush1.bf16.msra.mxu1 %v3731_v29  ;;  %637 = vmatprep.mubr.f32.mxu1 %v3496_v0 }
  0x9d   :  { %2521 = vmatprep.subr.bf16.mxu1 %v3734_v30  ;;  %2365 = vmatmul.mubr.msk.f32.gmra.mrb[12].mxu0 %vm151_vm0, %v111_v11  ;;  %v3787_v11 = vpack.c.bf16 %v488_v8, %v484_v7 }
  0x9e   :  { %2575 = vmatpush1.bf16.msra.mxu0 %v3705_v12  ;;  %282 = vmatprep.mubr.f32.mxu0 %v3496_v0 }
  0x9f   :  { %2577 = vmatprep.subr.bf16.mxu0 %v3708_v13 }
  0xa0   :  { %2523 = vmatpush1.bf16.msra.mxu1 %v3743_v36 }
  0xa1   :  { %2525 = vmatprep.subr.bf16.mxu1 %v3747_v37  ;;  %2366 = vmatmul.mubr.msk.f32.gmra.mrb[14].mxu0 %vm151_vm0, %v112_v19  ;;  %v131_v19 = vlaneseq }
  0xa2   :  { %2579 = vmatpush1.bf16.msra.mxu0 %v3718_v20  ;;  %742 = vmatprep.mubr.f32.mxu0 %v3496_v0 }
  0xa3   :  { %2613 = vmatprep.subr.bf16.mxu0 %v3626_v15  ;;  %v132_v26 = vshrl.u32 %v131_v19, 7 }
  0xa4   :  { %2527 = vmatpush1.bf16.msra.mxu1 %v3755_v43 }
  0xa5   :  { %2529 = vmatprep.subr.bf16.mxu1 %v3758_v44  ;;  %v133_v27 = vsub.s32 0, %v132_v26  ;;  %v137_v33 = vsub.s32 1, %v132_v26  ;;  %v141_v52 = vsub.s32 2, %v132_v26  ;;  %v145_v56 = vsub.s32 3, %v132_v26 }
  0xa7   :  { %v3816_v34 = vrot.slane %v129_v31, %v133_v27  ;;  %v3818_v35 = vrot.slane %v129_v31, %v137_v33  ;;  %v3822_v63 = vrot.slane %v129_v31, %v141_v52  ;;  %v3824_v2 = vrot.slane %v129_v31, %v145_v56 }
  0xa8   :  { %2531 = vmatpush1.bf16.msra.mxu1 %v3765_v50 }
  0xa9   :  { %2533 = vmatprep.subr.bf16.mxu1 %v3768_v51 }
  0xac   :  { %2535 = vmatpush1.bf16.msra.mxu1 %v3775_v58 }
  0xad   :  { %2537 = vmatprep.subr.bf16.mxu1 %v3778_v59 }
  0xb0   :  { %2539 = vmatpush1.bf16.msra.mxu1 %v3781_v3 }
  0xb1   :  { %2541 = vmatprep.subr.bf16.mxu1 %v3784_v4 }
  0xb4   :  { %2543 = vmatpush1.bf16.msra.mxu1 %v3787_v11 }
  0xb5   :  { %2545 = vmatprep.subr.bf16.mxu1 %v3790_v14 }
  0xb8   :  { %2547 = vmatpush1.bf16.msra.mxu1 %v3793_v18 }
  0xb9   :  { %2581 = vmatprep.subr.bf16.mxu1 %v3721_v23 }
  0xbb   :  { %638 = vmatmul.mubr.f32.vlgmr.msra.gmra.mrb[0].mxu1 %v3496_v0 }
  0xbc   :  { %2583 = vmatpush1.bf16.msra.mxu1 %v3731_v29  ;;  %813 = vmatprep.mubr.f32.mxu1 %v3496_v0 }
  0xbd   :  { %2585 = vmatprep.subr.bf16.mxu1 %v3734_v30 }
  0xc0   :  { %2587 = vmatpush1.bf16.msra.mxu1 %v3743_v36 }
  0xc1   :  { %2589 = vmatprep.subr.bf16.mxu1 %v3747_v37 }
  0xc4   :  { %2591 = vmatpush1.bf16.msra.mxu1 %v3755_v43 }
  0xc5   :  { %2593 = vmatprep.subr.bf16.mxu1 %v3758_v44 }
  0xc8   :  { %2595 = vmatpush1.bf16.msra.mxu1 %v3765_v50 }
  0xc9   :  { %2597 = vmatprep.subr.bf16.mxu1 %v3768_v51 }
  0xcc   :  { %2599 = vmatpush1.bf16.msra.mxu1 %v3775_v58 }
  0xcd   :  { %2601 = vmatprep.subr.bf16.mxu1 %v3778_v59 }
  0xd0   :  { %2603 = vmatpush1.bf16.msra.mxu1 %v3781_v3 }
  0xd1   :  { %2605 = vmatprep.subr.bf16.mxu1 %v3784_v4 }
  0xd4   :  { %2607 = vmatpush1.bf16.msra.mxu1 %v3787_v11 }
  0xd5   :  { %2609 = vmatprep.subr.bf16.mxu1 %v3790_v14 }
  0xd8   :  { %2611 = vmatpush1.bf16.msra.mxu1 %v3793_v18 }
  0xd9   :  { %2645 = vmatprep.subr.bf16.mxu1 %v3721_v23 }
 0x158   :  { %v242_v24 = vpop.f32.mrb[0].mxu0 }
 0x159   :  { %v244_v25 = vpop.f32.mrb[1].mxu0  ;;  %v243_v38 = vadd.f32 %v242_v24, %v3816_v34 }
 0x15a   :  { %v245_v39 = vadd.f32 %v244_v25, %v3818_v35 }
 0x16e   :  { %v568_v40 = vpop.f32.mrb[16].mxu1 }
 0x16f   :  { %v644_v41 = vadd.f32 %v568_v40, %v243_v38  ;;  %v570_v45 = vpop.f32.mrb[17].mxu1 }
 0x170   :  { %v645_v47 = vadd.f32 %v570_v45, %v245_v39 }
 0x171   :  { %v2375_v49 = vmul.f32 -1.442695, %v644_v41 }
 0x172   :  { %v2376_v48 = vmul.f32 -1.442695, %v645_v47 }
 0x174   :  { %3106 = vpow2.f32 %v2376_v48 }
 0x175   :  { %3108 = vpow2.f32 %v2375_v49 }
 0x17e   :  { %v3107_v53 = vpop.eup %3106 }
 0x17f   :  { %v3109_v57 = vpop.eup %3108  ;;  %v657_v60 = vadd.f32 1.0, %v3107_v53 }
 0x180   :  { %v651_v1 = vadd.f32 1.0, %v3109_v57 }
 0x181   :  { %3110 = vrcp.f32 %v657_v60 }
 0x182   :  { %3112 = vrcp.f32 %v651_v1 }
 0x18b   :  { %v3111_v17 = vpop.eup %3110 }
 0x18c   :  { %v3113_v19 = vpop.eup %3112  ;;  %v667_v25 = vmul.f32 0.0, %v3111_v17 }
 0x18e   :  { %v639_v7 = vpop.f32.mrb[0].mxu1 }
 0x18f   :  { %v3046_v8 = vadd.f32 %v639_v7, %v3822_v63  ;;  %v641_v9 = vpop.f32.mrb[1].mxu1 }
 0x190   :  { %v3047_v10 = vadd.f32 %v641_v9, %v3824_v2 }
 0x191   :  { %3114 = vtanh.f32 %v3046_v8 }
 0x192   :  { %v2377_v16 = vmul.f32 -1.442695, %v3047_v10 }
 0x194   :  { %3116 = vpow2.f32 %v2377_v16 }
 0x19b   :  { %v3115_v24 = vpop.eup %3114 }
 0x19c   :  { %v668_v26 = vmul.f32 %v3115_v24, %v3113_v19 }
 0x19e   :  { %v3117_v27 = vpop.eup %3116  ;;  %v3828_v33 = vadd.f32 %v668_v26, %v667_v25 }
 0x19f   :  { %v664_v31 = vadd.f32 1.0, %v3117_v27 }
 0x1a0   :  { %3118 = vtanh.f32 %v3828_v33 }
 0x1a1   :  { %3120 = vrcp.f32 %v664_v31 }
 0x1aa   :  { %v3119_v38 = vpop.eup %3118 }
 0x1ab   :  { %v3121_v39 = vpop.eup %3120 }
 0x1ac   :  { %v3831_v40 = vmul.f32 %v3121_v39, %v3119_v38 }
 0x1ae   :  { %743 = vmatmul.mubr.f32.vlgmr.msra.gmra.mrb[2].mxu0 %v3831_v40  ;;  %814 = vmatmul.mubr.f32.vlgmr.msra.gmra.mrb[2].mxu1 %v3831_v40 }
 0x1af   :  { %2615 = vmatpush1.bf16.msra.mxu0 %v3630_v21  ;;  %2647 = vmatpush1.bf16.msra.mxu1 %v3731_v29 }
 0x1b0   :  { %2617 = vmatprep.subr.bf16.mxu0 %v3633_v22  ;;  %2649 = vmatprep.subr.bf16.mxu1 %v3734_v30 }
 0x1b1   :  { %919 = vmatprep.mubr.f32.mxu0 %v3496_v0  ;;  %990 = vmatprep.mubr.f32.mxu1 %v3496_v0 }
 0x1b3   :  { %2619 = vmatpush1.bf16.msra.mxu0 %v3641_v28  ;;  %2651 = vmatpush1.bf16.msra.mxu1 %v3743_v36 }
 0x1b4   :  { %2621 = vmatprep.subr.bf16.mxu0 %v3644_v32  ;;  %2653 = vmatprep.subr.bf16.mxu1 %v3747_v37 }
 0x1b7   :  { %2623 = vmatpush1.bf16.msra.mxu0 %v3652_v42  ;;  %2655 = vmatpush1.bf16.msra.mxu1 %v3755_v43 }
 0x1b8   :  { %2625 = vmatprep.subr.bf16.mxu0 %v3655_v46  ;;  %2657 = vmatprep.subr.bf16.mxu1 %v3758_v44 }
 0x1bb   :  { %2627 = vmatpush1.bf16.msra.mxu0 %v3663_v54  ;;  %2659 = vmatpush1.bf16.msra.mxu1 %v3765_v50 }
 0x1bc   :  { %2629 = vmatprep.subr.bf16.mxu0 %v3666_v55  ;;  %2661 = vmatprep.subr.bf16.mxu1 %v3768_v51 }
 0x1bf   :  { %2631 = vmatpush1.bf16.msra.mxu0 %v3675_v61  ;;  %2663 = vmatpush1.bf16.msra.mxu1 %v3775_v58 }
 0x1c0   :  { %2633 = vmatprep.subr.bf16.mxu0 %v3678_v62  ;;  %2665 = vmatprep.subr.bf16.mxu1 %v3778_v59 }
 0x1c3   :  { %2635 = vmatpush1.bf16.msra.mxu0 %v3691_v5  ;;  %2667 = vmatpush1.bf16.msra.mxu1 %v3781_v3 }
 0x1c4   :  { %2637 = vmatprep.subr.bf16.mxu0 %v3694_v6  ;;  %2669 = vmatprep.subr.bf16.mxu1 %v3784_v4 }
 0x1c7   :  { %2639 = vmatpush1.bf16.msra.mxu0 %v3705_v12  ;;  %2671 = vmatpush1.bf16.msra.mxu1 %v3787_v11 }
 0x1c8   :  { %2641 = vmatprep.subr.bf16.mxu0 %v3708_v13  ;;  %2673 = vmatprep.subr.bf16.mxu1 %v3790_v14 }
 0x1cb   :  { %2643 = vmatpush1.bf16.msra.mxu0 %v3718_v20  ;;  %2675 = vmatpush1.bf16.msra.mxu1 %v3793_v18 }
 0x1cc   :  { %2677 = vmatprep.subr.bf16.mxu0 %v3626_v15  ;;  %2709 = vmatprep.subr.bf16.mxu1 %v3721_v23 }
 0x281   :  { %v744_v41 = vpop.f32.mrb[2].mxu0  ;;  %v815_v45 = vpop.f32.mrb[2].mxu1 }
 0x282   :  { %v3032_v47 = vadd.f32 %v744_v41, %v3816_v34  ;;  %v746_v48 = vpop.f32.mrb[3].mxu0  ;;  %v817_v49 = vpop.f32.mrb[3].mxu1  ;;  %v3048_v1 = vadd.f32 %v815_v45, %v3822_v63 }
 0x283   :  { %v3033_v52 = vadd.f32 %v746_v48, %v3818_v35  ;;  %v3049_v57 = vadd.f32 %v817_v49, %v3824_v2 }
 0x284   :  { %v2378_v53 = vmul.f32 -1.442695, %v3032_v47 }
 0x285   :  { %v2379_v56 = vmul.f32 -1.442695, %v3033_v52  ;;  %v2380_v60 = vmul.f32 -1.442695, %v3049_v57 }
 0x286   :  { %3122 = vpow2.f32 %v2378_v53 }
 0x287   :  { %3124 = vpow2.f32 %v2379_v56 }
 0x288   :  { %3126 = vpow2.f32 %v2380_v60 }
 0x289   :  { %3128 = vtanh.f32 %v3048_v1 }
 0x290   :  { %v3123_v7 = vpop.eup %3122 }
 0x291   :  { %v3125_v8 = vpop.eup %3124  ;;  %v827_v9 = vadd.f32 1.0, %v3123_v7 }
 0x292   :  { %v833_v10 = vadd.f32 1.0, %v3125_v8  ;;  %v3127_v16 = vpop.eup %3126 }
 0x293   :  { %3130 = vrcp.f32 %v827_v9  ;;  %v3129_v17 = vpop.eup %3128  ;;  %v840_v26 = vadd.f32 1.0, %v3127_v16 }
 0x294   :  { %3132 = vrcp.f32 %v833_v10 }
 0x295   :  { %3134 = vrcp.f32 %v840_v26 }
 0x29d   :  { %v3131_v19 = vpop.eup %3130 }
 0x29e   :  { %v3133_v24 = vpop.eup %3132  ;;  %v844_v25 = vmul.f32 %v3131_v19, %v3129_v17 }
 0x29f   :  { %v843_v27 = vmul.f32 %v3133_v24, %v3828_v33  ;;  %v3135_v38 = vpop.eup %3134 }
 0x2a1   :  { %v3874_v31 = vadd.f32 %v844_v25, %v843_v27 }
 0x2a3   :  { %3136 = vtanh.f32 %v3874_v31 }
 0x2ad   :  { %v3137_v39 = vpop.eup %3136 }
 0x2ae   :  { %v3877_v41 = vmul.f32 %v3137_v39, %v3135_v38 }
 0x2b0   :  { %920 = vmatmul.mubr.f32.vlgmr.msra.gmra.mrb[4].mxu0 %v3877_v41  ;;  %991 = vmatmul.mubr.f32.vlgmr.msra.gmra.mrb[4].mxu1 %v3877_v41 }
 0x2b1   :  { %2679 = vmatpush1.bf16.msra.mxu0 %v3630_v21  ;;  %2711 = vmatpush1.bf16.msra.mxu1 %v3731_v29 }
 0x2b2   :  { %2681 = vmatprep.subr.bf16.mxu0 %v3633_v22  ;;  %2713 = vmatprep.subr.bf16.mxu1 %v3734_v30 }
 0x2b3   :  { %1096 = vmatprep.mubr.f32.mxu0 %v3496_v0  ;;  %1167 = vmatprep.mubr.f32.mxu1 %v3496_v0 }
 0x2b5   :  { %2683 = vmatpush1.bf16.msra.mxu0 %v3641_v28  ;;  %2715 = vmatpush1.bf16.msra.mxu1 %v3743_v36 }
 0x2b6   :  { %2685 = vmatprep.subr.bf16.mxu0 %v3644_v32  ;;  %2717 = vmatprep.subr.bf16.mxu1 %v3747_v37 }
 0x2b9   :  { %2687 = vmatpush1.bf16.msra.mxu0 %v3652_v42  ;;  %2719 = vmatpush1.bf16.msra.mxu1 %v3755_v43 }
 0x2ba   :  { %2689 = vmatprep.subr.bf16.mxu0 %v3655_v46  ;;  %2721 = vmatprep.subr.bf16.mxu1 %v3758_v44 }
 0x2bd   :  { %2691 = vmatpush1.bf16.msra.mxu0 %v3663_v54  ;;  %2723 = vmatpush1.bf16.msra.mxu1 %v3765_v50 }
 0x2be   :  { %2693 = vmatprep.subr.bf16.mxu0 %v3666_v55  ;;  %2725 = vmatprep.subr.bf16.mxu1 %v3768_v51 }
 0x2c1   :  { %2695 = vmatpush1.bf16.msra.mxu0 %v3675_v61  ;;  %2727 = vmatpush1.bf16.msra.mxu1 %v3775_v58 }
 0x2c2   :  { %2697 = vmatprep.subr.bf16.mxu0 %v3678_v62  ;;  %2729 = vmatprep.subr.bf16.mxu1 %v3778_v59 }
 0x2c5   :  { %2699 = vmatpush1.bf16.msra.mxu0 %v3691_v5  ;;  %2731 = vmatpush1.bf16.msra.mxu1 %v3781_v3 }
 0x2c6   :  { %2701 = vmatprep.subr.bf16.mxu0 %v3694_v6  ;;  %2733 = vmatprep.subr.bf16.mxu1 %v3784_v4 }
 0x2c9   :  { %2703 = vmatpush1.bf16.msra.mxu0 %v3705_v12  ;;  %2735 = vmatpush1.bf16.msra.mxu1 %v3787_v11 }
 0x2ca   :  { %2705 = vmatprep.subr.bf16.mxu0 %v3708_v13  ;;  %2737 = vmatprep.subr.bf16.mxu1 %v3790_v14 }
 0x2cd   :  { %2707 = vmatpush1.bf16.msra.mxu0 %v3718_v20  ;;  %2739 = vmatpush1.bf16.msra.mxu1 %v3793_v18 }
 0x2ce   :  { %2741 = vmatprep.subr.bf16.mxu0 %v3626_v15  ;;  %2773 = vmatprep.subr.bf16.mxu1 %v3721_v23 }
 0x383   :  { %v921_v33 = vpop.f32.mrb[4].mxu0  ;;  %v992_v45 = vpop.f32.mrb[4].mxu1 }
 0x384   :  { %v3034_v47 = vadd.f32 %v921_v33, %v3816_v34  ;;  %v923_v48 = vpop.f32.mrb[5].mxu0  ;;  %v994_v49 = vpop.f32.mrb[5].mxu1  ;;  %v3050_v1 = vadd.f32 %v992_v45, %v3822_v63 }
 0x385   :  { %v3035_v52 = vadd.f32 %v923_v48, %v3818_v35  ;;  %v3051_v57 = vadd.f32 %v994_v49, %v3824_v2 }
 0x386   :  { %v2381_v53 = vmul.f32 -1.442695, %v3034_v47 }
 0x387   :  { %v2382_v56 = vmul.f32 -1.442695, %v3035_v52  ;;  %v2383_v60 = vmul.f32 -1.442695, %v3051_v57 }
 0x388   :  { %3138 = vpow2.f32 %v2381_v53 }
 0x389   :  { %3140 = vpow2.f32 %v2382_v56 }
 0x38a   :  { %3142 = vpow2.f32 %v2383_v60 }
 0x38b   :  { %3144 = vtanh.f32 %v3050_v1 }
 0x392   :  { %v3139_v7 = vpop.eup %3138 }
 0x393   :  { %v3141_v8 = vpop.eup %3140  ;;  %v1004_v9 = vadd.f32 1.0, %v3139_v7 }
 0x394   :  { %v1010_v10 = vadd.f32 1.0, %v3141_v8  ;;  %v3143_v16 = vpop.eup %3142 }
 0x395   :  { %3146 = vrcp.f32 %v1004_v9  ;;  %v3145_v17 = vpop.eup %3144  ;;  %v1017_v26 = vadd.f32 1.0, %v3143_v16 }
 0x396   :  { %3148 = vrcp.f32 %v1010_v10 }
 0x397   :  { %3150 = vrcp.f32 %v1017_v26 }
 0x39f   :  { %v3147_v19 = vpop.eup %3146 }
 0x3a0   :  { %v3149_v24 = vpop.eup %3148  ;;  %v1021_v25 = vmul.f32 %v3147_v19, %v3145_v17 }
 0x3a1   :  { %v1020_v27 = vmul.f32 %v3149_v24, %v3874_v31  ;;  %v3151_v39 = vpop.eup %3150 }
 0x3a3   :  { %v3920_v38 = vadd.f32 %v1021_v25, %v1020_v27 }
 0x3a5   :  { %3152 = vtanh.f32 %v3920_v38 }
 0x3af   :  { %v3153_v33 = vpop.eup %3152 }
 0x3b0   :  { %v3923_v45 = vmul.f32 %v3153_v33, %v3151_v39 }
 0x3b2   :  { %1097 = vmatmul.mubr.f32.vlgmr.msra.gmra.mrb[6].mxu0 %v3923_v45  ;;  %1168 = vmatmul.mubr.f32.vlgmr.msra.gmra.mrb[6].mxu1 %v3923_v45 }
 0x3b3   :  { %2743 = vmatpush1.bf16.msra.mxu0 %v3630_v21  ;;  %2775 = vmatpush1.bf16.msra.mxu1 %v3731_v29 }
 0x3b4   :  { %2745 = vmatprep.subr.bf16.mxu0 %v3633_v22  ;;  %2777 = vmatprep.subr.bf16.mxu1 %v3734_v30 }
 0x3b5   :  { %1273 = vmatprep.mubr.f32.mxu0 %v3496_v0  ;;  %1344 = vmatprep.mubr.f32.mxu1 %v3496_v0 }
 0x3b7   :  { %2747 = vmatpush1.bf16.msra.mxu0 %v3641_v28  ;;  %2779 = vmatpush1.bf16.msra.mxu1 %v3743_v36 }
 0x3b8   :  { %2749 = vmatprep.subr.bf16.mxu0 %v3644_v32  ;;  %2781 = vmatprep.subr.bf16.mxu1 %v3747_v37 }
 0x3bb   :  { %2751 = vmatpush1.bf16.msra.mxu0 %v3652_v42  ;;  %2783 = vmatpush1.bf16.msra.mxu1 %v3755_v43 }
 0x3bc   :  { %2753 = vmatprep.subr.bf16.mxu0 %v3655_v46  ;;  %2785 = vmatprep.subr.bf16.mxu1 %v3758_v44 }
 0x3bf   :  { %2755 = vmatpush1.bf16.msra.mxu0 %v3663_v54  ;;  %2787 = vmatpush1.bf16.msra.mxu1 %v3765_v50 }
 0x3c0   :  { %2757 = vmatprep.subr.bf16.mxu0 %v3666_v55  ;;  %2789 = vmatprep.subr.bf16.mxu1 %v3768_v51 }
 0x3c3   :  { %2759 = vmatpush1.bf16.msra.mxu0 %v3675_v61  ;;  %2791 = vmatpush1.bf16.msra.mxu1 %v3775_v58 }
 0x3c4   :  { %2761 = vmatprep.subr.bf16.mxu0 %v3678_v62  ;;  %2793 = vmatprep.subr.bf16.mxu1 %v3778_v59 }
 0x3c7   :  { %2763 = vmatpush1.bf16.msra.mxu0 %v3691_v5  ;;  %2795 = vmatpush1.bf16.msra.mxu1 %v3781_v3 }
 0x3c8   :  { %2765 = vmatprep.subr.bf16.mxu0 %v3694_v6  ;;  %2797 = vmatprep.subr.bf16.mxu1 %v3784_v4 }
 0x3cb   :  { %2767 = vmatpush1.bf16.msra.mxu0 %v3705_v12  ;;  %2799 = vmatpush1.bf16.msra.mxu1 %v3787_v11 }
 0x3cc   :  { %2769 = vmatprep.subr.bf16.mxu0 %v3708_v13  ;;  %2801 = vmatprep.subr.bf16.mxu1 %v3790_v14 }
 0x3cf   :  { %2771 = vmatpush1.bf16.msra.mxu0 %v3718_v20  ;;  %2803 = vmatpush1.bf16.msra.mxu1 %v3793_v18 }
 0x3d0   :  { %2805 = vmatprep.subr.bf16.mxu0 %v3626_v15  ;;  %2837 = vmatprep.subr.bf16.mxu1 %v3721_v23 }
 0x485   :  { %v1098_v31 = vpop.f32.mrb[6].mxu0  ;;  %v1169_v47 = vpop.f32.mrb[6].mxu1 }
 0x486   :  { %v3036_v48 = vadd.f32 %v1098_v31, %v3816_v34  ;;  %v1100_v49 = vpop.f32.mrb[7].mxu0  ;;  %v1171_v52 = vpop.f32.mrb[7].mxu1  ;;  %v3052_v7 = vadd.f32 %v1169_v47, %v3822_v63 }
 0x487   :  { %v3037_v53 = vadd.f32 %v1100_v49, %v3818_v35  ;;  %v3053_v60 = vadd.f32 %v1171_v52, %v3824_v2 }
 0x488   :  { %v2384_v56 = vmul.f32 -1.442695, %v3036_v48 }
 0x489   :  { %v2385_v57 = vmul.f32 -1.442695, %v3037_v53  ;;  %v2386_v1 = vmul.f32 -1.442695, %v3053_v60 }
 0x48a   :  { %3154 = vpow2.f32 %v2384_v56 }
 0x48b   :  { %3156 = vpow2.f32 %v2385_v57 }
 0x48c   :  { %3158 = vpow2.f32 %v2386_v1 }
 0x48d   :  { %3160 = vtanh.f32 %v3052_v7 }
 0x494   :  { %v3155_v8 = vpop.eup %3154 }
 0x495   :  { %v3157_v9 = vpop.eup %3156  ;;  %v1181_v10 = vadd.f32 1.0, %v3155_v8 }
 0x496   :  { %v1187_v16 = vadd.f32 1.0, %v3157_v9  ;;  %v3159_v17 = vpop.eup %3158 }
 0x497   :  { %3162 = vrcp.f32 %v1181_v10  ;;  %v3161_v19 = vpop.eup %3160  ;;  %v1194_v27 = vadd.f32 1.0, %v3159_v17 }
 0x498   :  { %3164 = vrcp.f32 %v1187_v16 }
 0x499   :  { %3166 = vrcp.f32 %v1194_v27 }
 0x4a1   :  { %v3163_v24 = vpop.eup %3162 }
 0x4a2   :  { %v3165_v25 = vpop.eup %3164  ;;  %v1198_v26 = vmul.f32 %v3163_v24, %v3161_v19 }
 0x4a3   :  { %v1197_v39 = vmul.f32 %v3165_v25, %v3920_v38  ;;  %v3167_v31 = vpop.eup %3166 }
 0x4a5   :  { %v3966_v33 = vadd.f32 %v1198_v26, %v1197_v39 }
 0x4a7   :  { %3168 = vtanh.f32 %v3966_v33 }
 0x4b1   :  { %v3169_v47 = vpop.eup %3168 }
 0x4b2   :  { %v3969_v48 = vmul.f32 %v3169_v47, %v3167_v31 }
 0x4b4   :  { %1274 = vmatmul.mubr.f32.vlgmr.msra.gmra.mrb[8].mxu0 %v3969_v48  ;;  %1345 = vmatmul.mubr.f32.vlgmr.msra.gmra.mrb[8].mxu1 %v3969_v48 }
 0x4b5   :  { %2807 = vmatpush1.bf16.msra.mxu0 %v3630_v21  ;;  %2839 = vmatpush1.bf16.msra.mxu1 %v3731_v29 }
 0x4b6   :  { %2809 = vmatprep.subr.bf16.mxu0 %v3633_v22  ;;  %2841 = vmatprep.subr.bf16.mxu1 %v3734_v30 }
 0x4b7   :  { %1450 = vmatprep.mubr.f32.mxu0 %v3496_v0  ;;  %1521 = vmatprep.mubr.f32.mxu1 %v3496_v0 }
 0x4b9   :  { %2811 = vmatpush1.bf16.msra.mxu0 %v3641_v28  ;;  %2843 = vmatpush1.bf16.msra.mxu1 %v3743_v36 }
 0x4ba   :  { %2813 = vmatprep.subr.bf16.mxu0 %v3644_v32  ;;  %2845 = vmatprep.subr.bf16.mxu1 %v3747_v37 }
 0x4bd   :  { %2815 = vmatpush1.bf16.msra.mxu0 %v3652_v42  ;;  %2847 = vmatpush1.bf16.msra.mxu1 %v3755_v43 }
 0x4be   :  { %2817 = vmatprep.subr.bf16.mxu0 %v3655_v46  ;;  %2849 = vmatprep.subr.bf16.mxu1 %v3758_v44 }
 0x4c1   :  { %2819 = vmatpush1.bf16.msra.mxu0 %v3663_v54  ;;  %2851 = vmatpush1.bf16.msra.mxu1 %v3765_v50 }
 0x4c2   :  { %2821 = vmatprep.subr.bf16.mxu0 %v3666_v55  ;;  %2853 = vmatprep.subr.bf16.mxu1 %v3768_v51 }
 0x4c5   :  { %2823 = vmatpush1.bf16.msra.mxu0 %v3675_v61  ;;  %2855 = vmatpush1.bf16.msra.mxu1 %v3775_v58 }
 0x4c6   :  { %2825 = vmatprep.subr.bf16.mxu0 %v3678_v62  ;;  %2857 = vmatprep.subr.bf16.mxu1 %v3778_v59 }
 0x4c9   :  { %2827 = vmatpush1.bf16.msra.mxu0 %v3691_v5  ;;  %2859 = vmatpush1.bf16.msra.mxu1 %v3781_v3 }
 0x4ca   :  { %2829 = vmatprep.subr.bf16.mxu0 %v3694_v6  ;;  %2861 = vmatprep.subr.bf16.mxu1 %v3784_v4 }
 0x4cd   :  { %2831 = vmatpush1.bf16.msra.mxu0 %v3705_v12  ;;  %2863 = vmatpush1.bf16.msra.mxu1 %v3787_v11 }
 0x4ce   :  { %2833 = vmatprep.subr.bf16.mxu0 %v3708_v13  ;;  %2865 = vmatprep.subr.bf16.mxu1 %v3790_v14 }
 0x4d1   :  { %2835 = vmatpush1.bf16.msra.mxu0 %v3718_v20  ;;  %2867 = vmatpush1.bf16.msra.mxu1 %v3793_v18 }
 0x4d2   :  { %2869 = vmatprep.subr.bf16.mxu0 %v3626_v15  ;;  %2901 = vmatprep.subr.bf16.mxu1 %v3721_v23 }
 0x587   :  { %v1275_v38 = vpop.f32.mrb[8].mxu0  ;;  %v1346_v49 = vpop.f32.mrb[8].mxu1 }
 0x588   :  { %v3038_v52 = vadd.f32 %v1275_v38, %v3816_v34  ;;  %v1277_v53 = vpop.f32.mrb[9].mxu0  ;;  %v1348_v56 = vpop.f32.mrb[9].mxu1  ;;  %v3054_v9 = vadd.f32 %v1346_v49, %v3822_v63 }
 0x589   :  { %v3039_v57 = vadd.f32 %v1277_v53, %v3818_v35  ;;  %v3055_v7 = vadd.f32 %v1348_v56, %v3824_v2 }
 0x58a   :  { %v2387_v60 = vmul.f32 -1.442695, %v3038_v52 }
 0x58b   :  { %v2388_v1 = vmul.f32 -1.442695, %v3039_v57  ;;  %v2389_v8 = vmul.f32 -1.442695, %v3055_v7 }
 0x58c   :  { %3170 = vpow2.f32 %v2387_v60 }
 0x58d   :  { %3172 = vpow2.f32 %v2388_v1 }
 0x58e   :  { %3174 = vpow2.f32 %v2389_v8 }
 0x58f   :  { %3176 = vtanh.f32 %v3054_v9 }
 0x596   :  { %v3171_v10 = vpop.eup %3170 }
 0x597   :  { %v3173_v16 = vpop.eup %3172  ;;  %v1358_v17 = vadd.f32 1.0, %v3171_v10 }
 0x598   :  { %v1364_v19 = vadd.f32 1.0, %v3173_v16  ;;  %v3175_v24 = vpop.eup %3174 }
 0x599   :  { %3178 = vrcp.f32 %v1358_v17  ;;  %v3177_v25 = vpop.eup %3176  ;;  %v1371_v31 = vadd.f32 1.0, %v3175_v24 }
 0x59a   :  { %3180 = vrcp.f32 %v1364_v19 }
 0x59b   :  { %3182 = vrcp.f32 %v1371_v31 }
 0x5a3   :  { %v3179_v26 = vpop.eup %3178 }
 0x5a4   :  { %v3181_v27 = vpop.eup %3180  ;;  %v1375_v39 = vmul.f32 %v3179_v26, %v3177_v25 }
 0x5a5   :  { %v1374_v47 = vmul.f32 %v3181_v27, %v3966_v33  ;;  %v3183_v49 = vpop.eup %3182 }
 0x5a7   :  { %v4012_v38 = vadd.f32 %v1375_v39, %v1374_v47 }
 0x5a9   :  { %3184 = vtanh.f32 %v4012_v38 }
 0x5b3   :  { %v3185_v52 = vpop.eup %3184 }
 0x5b4   :  { %v4015_v53 = vmul.f32 %v3185_v52, %v3183_v49 }
 0x5b6   :  { %1451 = vmatmul.mubr.f32.vlgmr.msra.gmra.mrb[10].mxu0 %v4015_v53  ;;  %1522 = vmatmul.mubr.f32.vlgmr.msra.gmra.mrb[10].mxu1 %v4015_v53 }
 0x5b7   :  { %2871 = vmatpush1.bf16.msra.mxu0 %v3630_v21  ;;  %2903 = vmatpush1.bf16.msra.mxu1 %v3731_v29 }
 0x5b8   :  { %2873 = vmatprep.subr.bf16.mxu0 %v3633_v22  ;;  %2905 = vmatprep.subr.bf16.mxu1 %v3734_v30 }
 0x5b9   :  { %1627 = vmatprep.mubr.f32.mxu0 %v3496_v0  ;;  %1698 = vmatprep.mubr.f32.mxu1 %v3496_v0 }
 0x5bb   :  { %2875 = vmatpush1.bf16.msra.mxu0 %v3641_v28  ;;  %2907 = vmatpush1.bf16.msra.mxu1 %v3743_v36 }
 0x5bc   :  { %2877 = vmatprep.subr.bf16.mxu0 %v3644_v32  ;;  %2909 = vmatprep.subr.bf16.mxu1 %v3747_v37 }
 0x5bf   :  { %2879 = vmatpush1.bf16.msra.mxu0 %v3652_v42  ;;  %2911 = vmatpush1.bf16.msra.mxu1 %v3755_v43 }
 0x5c0   :  { %2881 = vmatprep.subr.bf16.mxu0 %v3655_v46  ;;  %2913 = vmatprep.subr.bf16.mxu1 %v3758_v44 }
 0x5c3   :  { %2883 = vmatpush1.bf16.msra.mxu0 %v3663_v54  ;;  %2915 = vmatpush1.bf16.msra.mxu1 %v3765_v50 }
 0x5c4   :  { %2885 = vmatprep.subr.bf16.mxu0 %v3666_v55  ;;  %2917 = vmatprep.subr.bf16.mxu1 %v3768_v51 }
 0x5c7   :  { %2887 = vmatpush1.bf16.msra.mxu0 %v3675_v61  ;;  %2919 = vmatpush1.bf16.msra.mxu1 %v3775_v58 }
 0x5c8   :  { %2889 = vmatprep.subr.bf16.mxu0 %v3678_v62  ;;  %2921 = vmatprep.subr.bf16.mxu1 %v3778_v59 }
 0x5cb   :  { %2891 = vmatpush1.bf16.msra.mxu0 %v3691_v5  ;;  %2923 = vmatpush1.bf16.msra.mxu1 %v3781_v3 }
 0x5cc   :  { %2893 = vmatprep.subr.bf16.mxu0 %v3694_v6  ;;  %2925 = vmatprep.subr.bf16.mxu1 %v3784_v4 }
 0x5cf   :  { %2895 = vmatpush1.bf16.msra.mxu0 %v3705_v12  ;;  %2927 = vmatpush1.bf16.msra.mxu1 %v3787_v11 }
 0x5d0   :  { %2897 = vmatprep.subr.bf16.mxu0 %v3708_v13  ;;  %2929 = vmatprep.subr.bf16.mxu1 %v3790_v14 }
 0x5d3   :  { %2899 = vmatpush1.bf16.msra.mxu0 %v3718_v20  ;;  %2931 = vmatpush1.bf16.msra.mxu1 %v3793_v18 }
 0x5d4   :  { %2933 = vmatprep.subr.bf16.mxu0 %v3626_v15  ;;  %2965 = vmatprep.subr.bf16.mxu1 %v3721_v23 }
 0x689   :  { %v1452_v33 = vpop.f32.mrb[10].mxu0  ;;  %v1523_v56 = vpop.f32.mrb[10].mxu1 }
 0x68a   :  { %v3040_v57 = vadd.f32 %v1452_v33, %v3816_v34  ;;  %v1454_v60 = vpop.f32.mrb[11].mxu0  ;;  %v1525_v1 = vpop.f32.mrb[11].mxu1  ;;  %v3056_v17 = vadd.f32 %v1523_v56, %v3822_v63 }
 0x68b   :  { %v3041_v7 = vadd.f32 %v1454_v60, %v3818_v35  ;;  %v3057_v10 = vadd.f32 %v1525_v1, %v3824_v2  ;;  %v1924_v60 = vld [vmem:[#allocation12 + $0x20] sm:$0xff]  ;;  %v1925_v1 = vld [vmem:[#allocation12 + $0x28] sm:$0xff] }
 0x68c   :  { %v2390_v8 = vmul.f32 -1.442695, %v3040_v57 }
 0x68d   :  { %v2391_v9 = vmul.f32 -1.442695, %v3041_v7  ;;  %v2392_v16 = vmul.f32 -1.442695, %v3057_v10  ;;  %v3004_v7 = vpack.c.bf16 %v1925_v1, %v1924_v60 }
 0x68e   :  { %3186 = vpow2.f32 %v2390_v8  ;;  %v1926_v8 = vld [vmem:[#allocation12 + $0x30] sm:$0xff] }
 0x68f   :  { %3188 = vpow2.f32 %v2391_v9  ;;  %v1927_v9 = vld [vmem:[#allocation12 + $0x38] sm:$0xff] }
 0x690   :  { %3190 = vpow2.f32 %v2392_v16  ;;  %v3008_v10 = vpack.c.bf16 %v1927_v9, %v1926_v8  ;;  %v1928_v16 = vld [vmem:[#allocation12 + $0x40] sm:$0xff] }
 0x691   :  { %3192 = vtanh.f32 %v3056_v17  ;;  %v1929_v17 = vld [vmem:[#allocation12 + $0x48] sm:$0xff] }
 0x698   :  { %v3187_v15 = vpop.eup %3186 }
 0x699   :  { %v3189_v19 = vpop.eup %3188  ;;  %v1535_v23 = vadd.f32 1.0, %v3187_v15  ;;  %v3012_v15 = vpack.c.bf16 %v1929_v17, %v1928_v16 }
 0x69a   :  { %v1541_v24 = vadd.f32 1.0, %v3189_v19  ;;  %v3191_v25 = vpop.eup %3190  ;;  %v1930_v19 = vld [vmem:[#allocation12 + $0x50] sm:$0xff] }
 0x69b   :  { %3194 = vrcp.f32 %v1535_v23  ;;  %v3193_v26 = vpop.eup %3192  ;;  %v1548_v47 = vadd.f32 1.0, %v3191_v25  ;;  %v1931_v23 = vld [vmem:[#allocation12 + $0x58] sm:$0xff]  ;;  %v1932_v25 = vld [vmem:[#allocation12 + $0x60] sm:$0xff] }
 0x69c   :  { %3196 = vrcp.f32 %v1541_v24  ;;  %v3016_v24 = vpack.c.bf16 %v1931_v23, %v1930_v19 }
 0x69d   :  { %3198 = vrcp.f32 %v1548_v47 }
 0x6a5   :  { %v3195_v27 = vpop.eup %3194 }
 0x6a6   :  { %v3197_v39 = vpop.eup %3196  ;;  %v1552_v31 = vmul.f32 %v3195_v27, %v3193_v26  ;;  %v1933_v26 = vld [vmem:[#allocation12 + $0x68] sm:$0xff]  ;;  %v1934_v27 = vld [vmem:[#allocation12 + $0x70] sm:$0xff] }
 0x6a7   :  { %v1551_v49 = vmul.f32 %v3197_v39, %v4012_v38  ;;  %v3199_v33 = vpop.eup %3198  ;;  %v1935_v39 = vld [vmem:[#allocation12 + $0x78] sm:$0xff] }
 0x6a9   :  { %v4058_v52 = vadd.f32 %v1552_v31, %v1551_v49  ;;  %v3024_v31 = vpack.c.bf16 %v1935_v39, %v1934_v27 }
 0x6ab   :  { %3200 = vtanh.f32 %v4058_v52 }
 0x6b5   :  { %v3201_v56 = vpop.eup %3200 }
 0x6b6   :  { %v4061_v57 = vmul.f32 %v3201_v56, %v3199_v33 }
 0x6b8   :  { %1628 = vmatmul.mubr.f32.vlgmr.msra.gmra.mrb[12].mxu0 %v4061_v57  ;;  %1699 = vmatmul.mubr.f32.vlgmr.msra.gmra.mrb[12].mxu1 %v4061_v57 }
 0x6b9   :  { %2935 = vmatpush1.bf16.msra.mxu0 %v3630_v21  ;;  %2967 = vmatpush1.bf16.msra.mxu1 %v3731_v29  ;;  %v1921_v21 = vld [vmem:[#allocation12 + $0x8] sm:$0xff] }
 0x6ba   :  { %2937 = vmatprep.subr.bf16.mxu0 %v3633_v22  ;;  %2969 = vmatprep.subr.bf16.mxu1 %v3734_v30 }
 0x6bb   :  { %1804 = vmatprep.mubr.f32.mxu0 %v3496_v0  ;;  %1875 = vmatprep.mubr.f32.mxu1 %v3496_v0  ;;  %v1920_v0 = vld [vmem:[#allocation12] sm:$0xff] }
 0x6bc   :  { %v2996_v22 = vpack.c.bf16 %v1921_v21, %v1920_v0 }
 0x6bd   :  { %2939 = vmatpush1.bf16.msra.mxu0 %v3641_v28  ;;  %2971 = vmatpush1.bf16.msra.mxu1 %v3743_v36 }
 0x6be   :  { %2941 = vmatprep.subr.bf16.mxu0 %v3644_v32  ;;  %2973 = vmatprep.subr.bf16.mxu1 %v3747_v37 }
 0x6c1   :  { %2943 = vmatpush1.bf16.msra.mxu0 %v3652_v42  ;;  %2975 = vmatpush1.bf16.msra.mxu1 %v3755_v43 }
 0x6c2   :  { %2945 = vmatprep.subr.bf16.mxu0 %v3655_v46  ;;  %2977 = vmatprep.subr.bf16.mxu1 %v3758_v44 }
 0x6c5   :  { %2947 = vmatpush1.bf16.msra.mxu0 %v3663_v54  ;;  %2979 = vmatpush1.bf16.msra.mxu1 %v3765_v50 }
 0x6c6   :  { %2949 = vmatprep.subr.bf16.mxu0 %v3666_v55  ;;  %2981 = vmatprep.subr.bf16.mxu1 %v3768_v51 }
 0x6c9   :  { %2951 = vmatpush1.bf16.msra.mxu0 %v3675_v61  ;;  %2983 = vmatpush1.bf16.msra.mxu1 %v3775_v58 }
 0x6ca   :  { %2953 = vmatprep.subr.bf16.mxu0 %v3678_v62  ;;  %2985 = vmatprep.subr.bf16.mxu1 %v3778_v59 }
 0x6cd   :  { %2955 = vmatpush1.bf16.msra.mxu0 %v3691_v5  ;;  %2987 = vmatpush1.bf16.msra.mxu1 %v3781_v3  ;;  %v1922_v3 = vld [vmem:[#allocation12 + $0x10] sm:$0xff] }
 0x6ce   :  { %2957 = vmatprep.subr.bf16.mxu0 %v3694_v6  ;;  %2989 = vmatprep.subr.bf16.mxu1 %v3784_v4  ;;  %v1923_v4 = vld [vmem:[#allocation12 + $0x18] sm:$0xff] }
 0x6cf   :  { %v3000_v38 = vpack.c.bf16 %v1923_v4, %v1922_v3 }
 0x6d1   :  { %2959 = vmatpush1.bf16.msra.mxu0 %v3705_v12  ;;  %2991 = vmatpush1.bf16.msra.mxu1 %v3787_v11 }
 0x6d2   :  { %2961 = vmatprep.subr.bf16.mxu0 %v3708_v13  ;;  %2993 = vmatprep.subr.bf16.mxu1 %v3790_v14 }
 0x6d5   :  { %2963 = vmatpush1.bf16.msra.mxu0 %v3718_v20  ;;  %2995 = vmatpush1.bf16.msra.mxu1 %v3793_v18 }
 0x6d6   :  { %2997 = vmatprep.subr.bf16.mxu0 %v2996_v22 }
 0x78b   :  { %v1629_v28 = vpop.f32.mrb[12].mxu0  ;;  %v1700_v32 = vpop.f32.mrb[12].mxu1 }
 0x78c   :  { %v3042_v42 = vadd.f32 %v1629_v28, %v3816_v34  ;;  %v1631_v46 = vpop.f32.mrb[13].mxu0  ;;  %v1702_v54 = vpop.f32.mrb[13].mxu1  ;;  %v3058_v12 = vadd.f32 %v1700_v32, %v3822_v63 }
 0x78d   :  { %v3043_v55 = vadd.f32 %v1631_v46, %v3818_v35  ;;  %v3059_v5 = vadd.f32 %v1702_v54, %v3824_v2 }
 0x78e   :  { %v2393_v61 = vmul.f32 -1.442695, %v3042_v42 }
 0x78f   :  { %v2394_v62 = vmul.f32 -1.442695, %v3043_v55  ;;  %v2395_v6 = vmul.f32 -1.442695, %v3059_v5 }
 0x790   :  { %3202 = vpow2.f32 %v2393_v61 }
 0x791   :  { %3204 = vpow2.f32 %v2394_v62 }
 0x792   :  { %3206 = vpow2.f32 %v2395_v6 }
 0x793   :  { %3208 = vtanh.f32 %v3058_v12 }
 0x79a   :  { %v3203_v13 = vpop.eup %3202 }
 0x79b   :  { %v3205_v20 = vpop.eup %3204  ;;  %v1712_v29 = vadd.f32 1.0, %v3203_v13 }
 0x79c   :  { %v1718_v30 = vadd.f32 1.0, %v3205_v20  ;;  %v3207_v36 = vpop.eup %3206 }
 0x79d   :  { %3210 = vrcp.f32 %v1712_v29  ;;  %v3209_v37 = vpop.eup %3208  ;;  %v1725_v51 = vadd.f32 1.0, %v3207_v36 }
 0x79e   :  { %3212 = vrcp.f32 %v1718_v30 }
 0x79f   :  { %3214 = vrcp.f32 %v1725_v51 }
 0x7a7   :  { %v3211_v43 = vpop.eup %3210 }
 0x7a8   :  { %v3213_v44 = vpop.eup %3212  ;;  %v1729_v50 = vmul.f32 %v3211_v43, %v3209_v37 }
 0x7a9   :  { %v1728_v58 = vmul.f32 %v3213_v44, %v4058_v52  ;;  %v3215_v11 = vpop.eup %3214 }
 0x7ab   :  { %v4102_v59 = vadd.f32 %v1729_v50, %v1728_v58 }
 0x7ad   :  { %3216 = vtanh.f32 %v4102_v59 }
 0x7b7   :  { %v3217_v14 = vpop.eup %3216 }
 0x7b8   :  { %v1732_v18 = vmul.f32 %v3217_v14, %v3215_v11 }
 0x7ba   :  { %1805 = vmatmul.mubr.f32.vlgmr.msra.gmra.mrb[14].mxu0 %v1732_v18  ;;  %1876 = vmatmul.mubr.f32.vlgmr.msra.gmra.mrb[14].mxu1 %v1732_v18 }
 0x7bb   :  { %2999 = vmatpush3.bf16.msra.mxu0 %v2996_v22  ;;  %2456 = vmatprep.mubr.f32.mxu0 %v3831_v40  ;;  %v3020_v40 = vpack.c.bf16 %v1933_v26, %v1932_v25 }
 0x7bc   :  { %3001 = vmatprep.subr.bf16.mxu0 %v3000_v38 }
 0x7bf   :  { %3003 = vmatpush3.bf16.msra.mxu0 %v3000_v38 }
 0x7c0   :  { %3005 = vmatprep.subr.bf16.mxu0 %v3004_v7 }
 0x7c3   :  { %3007 = vmatpush3.bf16.msra.mxu0 %v3004_v7 }
 0x7c4   :  { %3009 = vmatprep.subr.bf16.mxu0 %v3008_v10 }
 0x7c7   :  { %3011 = vmatpush3.bf16.msra.mxu0 %v3008_v10 }
 0x7c8   :  { %3013 = vmatprep.subr.bf16.mxu0 %v3012_v15 }
 0x7cb   :  { %3015 = vmatpush3.bf16.msra.mxu0 %v3012_v15 }
 0x7cc   :  { %3017 = vmatprep.subr.bf16.mxu0 %v3016_v24 }
 0x7cf   :  { %3019 = vmatpush3.bf16.msra.mxu0 %v3016_v24 }
 0x7d0   :  { %3021 = vmatprep.subr.bf16.mxu0 %v3020_v40 }
 0x7d3   :  { %3023 = vmatpush3.bf16.msra.mxu0 %v3020_v40 }
 0x7d4   :  { %3025 = vmatprep.subr.bf16.mxu0 %v3024_v31 }
 0x7d7   :  { %3027 = vmatpush3.bf16.msra.mxu0 %v3024_v31 }
 0x7da   :  { %2457 = vmatmul.mubr.f32.vlgmr.msra.gmra.mrb[16].mxu0 %v3877_v41 }
 0x7db   :  { %2459 = vmatprep.mubr.f32.mxu0 %v3923_v45 }
 0x7de   :  { %2460 = vmatmul.mubr.f32.gmra.mrb[18].mxu0 %v3969_v48 }
 0x7df   :  { %2462 = vmatprep.mubr.f32.mxu0 %v4015_v53 }
 0x7e2   :  { %2463 = vmatmul.mubr.f32.gmra.mrb[20].mxu0 %v4061_v57 }
 0x7e3   :  { %2465 = vmatprep.mubr.f32.mxu0 %v1732_v18 }
 0x88d   :  { %v1806_v47 = vpop.f32.mrb[14].mxu0  ;;  %v1877_v49 = vpop.f32.mrb[14].mxu1 }
 0x88e   :  { %v3044_v52 = vadd.f32 %v1806_v47, %v3816_v34  ;;  %v1808_v33 = vpop.f32.mrb[15].mxu0  ;;  %v1879_v56 = vpop.f32.mrb[15].mxu1  ;;  %v3060_v48 = vadd.f32 %v1877_v49, %v3822_v63 }
 0x88f   :  { %v3045_v0 = vadd.f32 %v1808_v33, %v3818_v35  ;;  %v3061_v41 = vadd.f32 %v1879_v56, %v3824_v2  ;;  %v2399_v2 = vld [vmem:[#allocation13] ss:$0 sm:$0xff] }
 0x890   :  { %v2396_v21 = vmul.f32 -1.442695, %v3044_v52 }
 0x891   :  { %v2397_v22 = vmul.f32 -1.442695, %v3045_v0  ;;  %v2398_v45 = vmul.f32 -1.442695, %v3061_v41 }
 0x892   :  { %3218 = vpow2.f32 %v2396_v21 }
 0x893   :  { %3220 = vpow2.f32 %v2397_v22 }
 0x894   :  { %3222 = vpow2.f32 %v2398_v45 }
 0x895   :  { %3224 = vtanh.f32 %v3060_v48 }
 0x89c   :  { %v3219_v53 = vpop.eup %3218 }
 0x89d   :  { %v3221_v57 = vpop.eup %3220  ;;  %v1889_v28 = vadd.f32 1.0, %v3219_v53 }
 0x89e   :  { %v1895_v32 = vadd.f32 1.0, %v3221_v57  ;;  %v3223_v34 = vpop.eup %3222 }
 0x89f   :  { %3226 = vrcp.f32 %v1889_v28  ;;  %v3225_v42 = vpop.eup %3224  ;;  %v1902_v55 = vadd.f32 1.0, %v3223_v34 }
 0x8a0   :  { %3228 = vrcp.f32 %v1895_v32 }
 0x8a1   :  { %3230 = vrcp.f32 %v1902_v55 }
 0x8a9   :  { %v3227_v35 = vpop.eup %3226 }
 0x8aa   :  { %v3229_v46 = vpop.eup %3228  ;;  %v1906_v54 = vmul.f32 %v3227_v35, %v3225_v42 }
 0x8ab   :  { %v1905_v61 = vmul.f32 %v3229_v46, %v4102_v59  ;;  %v3231_v58 = vpop.eup %3230 }
 0x8ad   :  { %v2458_v62 = vpop.f32.mrb[16].mxu0  ;;  %v1907_v63 = vadd.f32 %v1906_v54, %v1905_v61 }
 0x8ae   :  { %v4116_v5 = vadd.f32 %v2458_v62, %v2399_v2  ;;  %v2009_v6 = vpop.f32.mrb[17].mxu0 }
 0x8af   :  { %3232 = vtanh.f32 %v1907_v63  ;;  %v4118_v12 = vadd.f32 %v2399_v2, %v2009_v6 }
 0x8b0   :  { %v2157_v13 = vsel %vm2153_vm1, %v4116_v5, -inf  ;;  %v2052_v63 = vsel %vm2048_vm2, %v4116_v5, -inf }
 0x8b1   :  { %2158 = vmax.xlane.f32.xlu0 %v2157_v13  ;;  %v2461_v20 = vpop.f32.mrb[18].mxu0  ;;  %v2154_v43 = vsel %vm2153_vm1, %v4118_v12, -inf  ;;  %v2049_v53 = vsel %vm2048_vm2, %v4118_v12, -inf }
 0x8b2   :  { %v4122_v29 = vadd.f32 %v2461_v20, %v2399_v2  ;;  %v2019_v30 = vpop.f32.mrb[19].mxu0 }
 0x8b3   :  { %v4124_v36 = vadd.f32 %v2399_v2, %v2019_v30 }
 0x8b4   :  { %v2163_v37 = vsel %vm2153_vm1, %v4122_v29, -inf }
 0x8b5   :  { %2164 = vmax.xlane.f32.xlu1 %v2163_v37  ;;  %v2464_v44 = vpop.f32.mrb[20].mxu0  ;;  %2155 = vmax.xlane.f32.xlu0 %v2154_v43  ;;  %v2160_v3 = vsel %vm2153_vm1, %v4124_v36, -inf  ;;  %v2055_v57 = vsel %vm2048_vm2, %v4124_v36, -inf }
 0x8b6   :  { %v2029_v50 = vpop.f32.mrb[21].mxu0  ;;  %v4132_v59 = vadd.f32 %v2464_v44, %v2399_v2 }
 0x8b7   :  { %v4130_v51 = vadd.f32 %v2399_v2, %v2029_v50 }
 0x8b8   :  { %v2169_v18 = vsel %vm2153_vm1, %v4132_v59, -inf  ;;  %v2064_v13 = vsel %vm2048_vm2, %v4132_v59, -inf }
 0x8b9   :  { %v3233_v4 = vpop.eup %3232  ;;  %2161 = vmax.xlane.f32.xlu1 %v2160_v3  ;;  %v2166_v11 = vsel %vm2153_vm1, %v4130_v51, -inf  ;;  %v2061_v6 = vsel %vm2048_vm2, %v4130_v51, -inf }
 0x8ba   :  { %2167 = vmax.xlane.f32.xlu0 %v2166_v11  ;;  %v1909_v14 = vmul.f32 %v3233_v4, %v3231_v58 }
 0x8bc   :  { %2466 = vmatmul.mubr.f32.gmra.mrb[22].mxu0 %v1909_v14 }
 0x8bd   :  { %2170 = vmax.xlane.f32.xlu1 %v2169_v18 }
 0x93e   :  { %v2159_v38 = vpop.xlane.xlu0 %2158 }
 0x93f   :  { %v4148_v15 = vsub.f32 %v4116_v5, %v2159_v38 }
 0x941   :  { %v2188_v40 = vmul.f32 1.442695, %v4148_v15 }
 0x942   :  { %v2156_v60 = vpop.xlane.xlu0 %2155  ;;  %v2165_v9 = vpop.xlane.xlu1 %2164 }
 0x943   :  { %v4141_v1 = vsub.f32 %v4118_v12, %v2156_v60  ;;  %v4164_v31 = vsub.f32 %v4122_v29, %v2165_v9 }
 0x945   :  { %v2186_v7 = vmul.f32 1.442695, %v4141_v1  ;;  %v2192_v33 = vmul.f32 1.442695, %v4164_v31 }
 0x946   :  { %v2162_v23 = vpop.xlane.xlu1 %2161 }
 0x947   :  { %3234 = vpow2.f32 %v2186_v7  ;;  %v2168_v26 = vpop.xlane.xlu0 %2167  ;;  %v4158_v27 = vsub.f32 %v4124_v36, %v2162_v23 }
 0x948   :  { %v4161_v39 = vsub.f32 %v4130_v51, %v2168_v26  ;;  %3236 = vpow2.f32 %v2188_v40 }
 0x949   :  { %v2190_v47 = vmul.f32 1.442695, %v4158_v27 }
 0x94a   :  { %v2171_v49 = vpop.xlane.xlu1 %2170  ;;  %v2194_v52 = vmul.f32 1.442695, %v4161_v39 }
 0x94b   :  { %3238 = vpow2.f32 %v2190_v47  ;;  %v4170_v56 = vsub.f32 %v4132_v59, %v2171_v49 }
 0x94c   :  { %3240 = vpow2.f32 %v2194_v52 }
 0x94d   :  { %3242 = vpow2.f32 %v2192_v33  ;;  %v2196_v0 = vmul.f32 1.442695, %v4170_v56 }
 0x94f   :  { %3244 = vpow2.f32 %v2196_v0 }
 0x951   :  { %v3235_v8 = vpop.eup %3234 }
 0x952   :  { %2210 = vrot.lane.b32.xlu0 %v3235_v8, %s3497_s5  ;;  %v3237_v21 = vpop.eup %3236 }
 0x955   :  { %v3239_v22 = vpop.eup %3238 }
 0x956   :  { %v3241_v41 = vpop.eup %3240 }
 0x957   :  { %v3243_v45 = vpop.eup %3242 }
 0x959   :  { %v3245_v48 = vpop.eup %3244 }
 0x98f   :  { %v2467_v10 = vpop.f32.mrb[22].mxu0 }
 0x990   :  { %v4145_v16 = vadd.f32 %v2467_v10, %v2399_v2  ;;  %v2039_v17 = vpop.f32.mrb[23].mxu0 }
 0x991   :  { %v4150_v19 = vadd.f32 %v2399_v2, %v2039_v17  ;;  %v2058_v2 = vsel %vm2048_vm2, %v4122_v29, -inf }
 0x992   :  { %v2175_v24 = vsel %vm2153_vm1, %v4145_v16, -inf  ;;  %v2070_v37 = vsel %vm2048_vm2, %v4145_v16, -inf }
 0x993   :  { %2176 = vmax.xlane.f32.xlu1 %v2175_v24  ;;  %v2172_v25 = vsel %vm2153_vm1, %v4150_v19, -inf  ;;  %v2067_v20 = vsel %vm2048_vm2, %v4150_v19, -inf }
 0x994   :  { %2173 = vmax.xlane.f32.xlu0 %v2172_v25 }
 0x9a4   :  { %2212 = vrot.lane.b32.xlu1 %v3237_v21, %s3497_s5 }
 0x9a8   :  { %2214 = vrot.lane.b32.xlu1 %v3239_v22, %s3497_s5 }
 0x9aa   :  { %2218 = vrot.lane.b32.xlu0 %v3241_v41, %s3497_s5 }
 0x9ac   :  { %2216 = vrot.lane.b32.xlu1 %v3243_v45, %s3497_s5 }
 0x9b0   :  { %2220 = vrot.lane.b32.xlu1 %v3245_v48, %s3497_s5 }
 0x9c4   :  { %v2211_v28 = vpop.permute.xlu0 %2210 }
 0x9c5   :  { %v2235_v43 = vsel %vm2234_vm3, %v2211_v28, 0.0 }
 0x9c9   :  { %2050 = vmax.xlane.f32.xlu0 %v2049_v53 }
 0x9cd   :  { %2056 = vmax.xlane.f32.xlu0 %v2055_v57 }
 0xa20   :  { %v2177_v32 = vpop.xlane.xlu1 %2176 }
 0xa21   :  { %v4183_v34 = vsub.f32 %v4145_v16, %v2177_v32  ;;  %v2174_v42 = vpop.xlane.xlu0 %2173 }
 0xa22   :  { %v4186_v35 = vsub.f32 %v4150_v19, %v2174_v42 }
 0xa23   :  { %v2200_v46 = vmul.f32 1.442695, %v4183_v34 }
 0xa24   :  { %v2198_v54 = vmul.f32 1.442695, %v4186_v35  ;;  %v2213_v62 = vpop.permute.xlu1 %2212 }
 0xa25   :  { %3246 = vpow2.f32 %v2200_v46  ;;  %v2238_v50 = vsel %vm2234_vm3, %v2213_v62, 0.0  ;;  %v2219_v3 = vpop.permute.xlu0 %2218 }
 0xa26   :  { %3248 = vpow2.f32 %v2198_v54  ;;  %v2247_v11 = vsel %vm2234_vm3, %v2219_v3, 0.0 }
 0xa28   :  { %v2215_v30 = vpop.permute.xlu1 %2214 }
 0xa29   :  { %v2241_v58 = vsel %vm2234_vm3, %v2215_v30, 0.0 }
 0xa2c   :  { %v2217_v44 = vpop.permute.xlu1 %2216 }
 0xa2d   :  { %v2244_v4 = vsel %vm2234_vm3, %v2217_v44, 0.0 }
 0xa2f   :  { %v3247_v55 = vpop.eup %3246 }
 0xa30   :  { %v3249_v61 = vpop.eup %3248  ;;  %2224 = vrot.lane.b32.xlu1 %v3247_v55, %s3497_s5  ;;  %v2221_v14 = vpop.permute.xlu1 %2220 }
 0xa31   :  { %2222 = vrot.lane.b32.xlu0 %v3249_v61, %s3497_s5  ;;  %v2250_v18 = vsel %vm2234_vm3, %v2221_v14, 0.0 }
 0xa50   :  { %2059 = vmax.xlane.f32.xlu0 %v2058_v2 }
 0xa54   :  { %2053 = vmax.xlane.f32.xlu1 %v2052_v63  ;;  %2062 = vmax.xlane.f32.xlu0 %v2061_v6 }
 0xa56   :  { %v2051_v38 = vpop.xlane.xlu0 %2050 }
 0xa57   :  { %v4211_v60 = vsub.f32 %v4118_v12, %v2051_v38 }
 0xa58   :  { %2065 = vmax.xlane.f32.xlu1 %v2064_v13  ;;  %2068 = vmax.xlane.f32.xlu0 %v2067_v20 }
 0xa59   :  { %v2081_v8 = vmul.f32 1.442695, %v4211_v60 }
 0xa5a   :  { %v2057_v7 = vpop.xlane.xlu0 %2056 }
 0xa5b   :  { %v4215_v9 = vsub.f32 %v4124_v36, %v2057_v7  ;;  %3250 = vpow2.f32 %v2081_v8 }
 0xa5c   :  { %2071 = vmax.xlane.f32.xlu1 %v2070_v37  ;;  %2236 = vadd.xlane.f32.xlu0 %v2235_v43 }
 0xa5d   :  { %v2085_v10 = vmul.f32 1.442695, %v4215_v9 }
 0xa5f   :  { %3252 = vpow2.f32 %v2085_v10 }
 0xa60   :  { %2239 = vadd.xlane.f32.xlu1 %v2238_v50  ;;  %2242 = vadd.xlane.f32.xlu0 %v2241_v58 }
 0xa64   :  { %2245 = vadd.xlane.f32.xlu1 %v2244_v4  ;;  %2248 = vadd.xlane.f32.xlu0 %v2247_v11 }
 0xa65   :  { %v3251_v26 = vpop.eup %3250 }
 0xa66   :  { %v2097_v12 = vsel %vm2048_vm2, %v3251_v26, 0.0 }
 0xa68   :  { %2251 = vadd.xlane.f32.xlu1 %v2250_v18 }
 0xa69   :  { %v3253_v40 = vpop.eup %3252 }
 0xa6a   :  { %v2103_v36 = vsel %vm2048_vm2, %v3253_v40, 0.0 }
 0xaa2   :  { %v2225_v17 = vpop.permute.xlu1 %2224 }
 0xaa3   :  { %v2223_v23 = vpop.permute.xlu0 %2222  ;;  %v2256_v24 = vsel %vm2234_vm3, %v2225_v17, 0.0 }
 0xaa4   :  { %2257 = vadd.xlane.f32.xlu1 %v2256_v24  ;;  %v2253_v25 = vsel %vm2234_vm3, %v2223_v23, 0.0 }
 0xaa5   :  { %2254 = vadd.xlane.f32.xlu0 %v2253_v25 }
 0xaa9   :  { %2098 = vadd.xlane.f32.xlu0 %v2097_v12 }
 0xaad   :  { %2104 = vadd.xlane.f32.xlu0 %v2103_v36 }
 0xadd   :  { %v2060_v47 = vpop.xlane.xlu0 %2059 }
 0xade   :  { %v4223_v49 = vsub.f32 %v4122_v29, %v2060_v47 }
 0xae0   :  { %v2087_v22 = vmul.f32 1.442695, %v4223_v49 }
 0xae1   :  { %v2054_v52 = vpop.xlane.xlu1 %2053  ;;  %v2063_v33 = vpop.xlane.xlu0 %2062 }
 0xae2   :  { %v4226_v0 = vsub.f32 %v4116_v5, %v2054_v52  ;;  %v4229_v21 = vsub.f32 %v4130_v51, %v2063_v33 }
 0xae4   :  { %v2083_v41 = vmul.f32 1.442695, %v4226_v0  ;;  %v2089_v45 = vmul.f32 1.442695, %v4229_v21 }
 0xae5   :  { %v2066_v48 = vpop.xlane.xlu1 %2065  ;;  %v2069_v53 = vpop.xlane.xlu0 %2068 }
 0xae6   :  { %3254 = vpow2.f32 %v2083_v41  ;;  %v4235_v29 = vsub.f32 %v4132_v59, %v2066_v48  ;;  %v4238_v57 = vsub.f32 %v4150_v19, %v2069_v53 }
 0xae7   :  { %3256 = vpow2.f32 %v2089_v45 }
 0xae8   :  { %3258 = vpow2.f32 %v2087_v22  ;;  %v2091_v5 = vmul.f32 1.442695, %v4235_v29  ;;  %v2093_v51 = vmul.f32 1.442695, %v4238_v57 }
 0xae9   :  { %v2072_v28 = vpop.xlane.xlu1 %2071  ;;  %v2237_v46 = vpop.xlane.xlu0 %2236 }
 0xaea   :  { %v4243_v32 = vsub.f32 %v4145_v16, %v2072_v28  ;;  %3260 = vpow2.f32 %v2093_v51 }
 0xaeb   :  { %3262 = vpow2.f32 %v2091_v5 }
 0xaec   :  { %v2095_v42 = vmul.f32 1.442695, %v4243_v32 }
 0xaed   :  { %v2243_v62 = vpop.xlane.xlu0 %2242  ;;  %v2240_v13 = vpop.xlane.xlu1 %2239 }
 0xaee   :  { %3264 = vpow2.f32 %v2095_v42 }
 0xaef   :  { %3266 = vlog2.f32 %v2237_v46 }
 0xaf0   :  { %v3255_v59 = vpop.eup %3254  ;;  %3268 = vlog2.f32 %v2240_v13 }
 0xaf1   :  { %v3257_v54 = vpop.eup %3256  ;;  %v2100_v19 = vsel %vm2048_vm2, %v3255_v59, 0.0  ;;  %v2249_v37 = vpop.xlane.xlu0 %2248 }
 0xaf2   :  { %v3259_v55 = vpop.eup %3258  ;;  %2101 = vadd.xlane.f32.xlu1 %v2100_v19  ;;  %v2109_v61 = vsel %vm2048_vm2, %v3257_v54, 0.0  ;;  %3270 = vlog2.f32 %v2249_v37  ;;  %v2246_v44 = vpop.xlane.xlu1 %2245 }
 0xaf3   :  { %2110 = vadd.xlane.f32.xlu0 %v2109_v61  ;;  %v2106_v16 = vsel %vm2048_vm2, %v3259_v55, 0.0  ;;  %3272 = vlog2.f32 %v2243_v62 }
 0xaf4   :  { %v3261_v2 = vpop.eup %3260  ;;  %3274 = vlog2.f32 %v2246_v44 }
 0xaf5   :  { %v3263_v63 = vpop.eup %3262  ;;  %v2115_v6 = vsel %vm2048_vm2, %v3261_v2, 0.0 }
 0xaf6   :  { %2107 = vadd.xlane.f32.xlu1 %v2106_v16  ;;  %v2112_v20 = vsel %vm2048_vm2, %v3263_v63, 0.0  ;;  %v2252_v58 = vpop.xlane.xlu1 %2251 }
 0xaf7   :  { %2116 = vadd.xlane.f32.xlu0 %v2115_v6  ;;  %3276 = vlog2.f32 %v2252_v58 }
 0xaf8   :  { %v3265_v30 = vpop.eup %3264 }
 0xaf9   :  { %v2118_v43 = vsel %vm2048_vm2, %v3265_v30, 0.0  ;;  %v3267_v50 = vpop.eup %3266 }
 0xafa   :  { %2113 = vadd.xlane.f32.xlu1 %v2112_v20  ;;  %v3269_v3 = vpop.eup %3268  ;;  %v2260_v4 = vmul.f32 0.6931472, %v3267_v50 }
 0xafb   :  { %v2262_v14 = vmul.f32 0.6931472, %v3269_v3 }
 0xafc   :  { %v3271_v11 = vpop.eup %3270  ;;  %v2275_v7 = vsub.f32 %v4141_v1, %v2260_v4 }
 0xafd   :  { %v3273_v18 = vpop.eup %3272  ;;  %v2268_v38 = vmul.f32 0.6931472, %v3271_v11  ;;  %v2276_v10 = vsub.f32 %v4148_v15, %v2262_v14 }
 0xafe   :  { %2119 = vadd.xlane.f32.xlu1 %v2118_v43  ;;  %v2264_v8 = vmul.f32 0.6931472, %v3273_v18  ;;  %v3275_v17 = vpop.eup %3274 }
 0xaff   :  { %v2279_v23 = vsub.f32 %v4161_v39, %v2268_v38  ;;  %v2266_v24 = vmul.f32 0.6931472, %v3275_v17 }
 0xb00   :  { %v2277_v25 = vsub.f32 %v4158_v27, %v2264_v8 }
 0xb01   :  { %v3277_v26 = vpop.eup %3276  ;;  %v2278_v1 = vsub.f32 %v4164_v31, %v2266_v24 }
 0xb02   :  { %v2270_v12 = vmul.f32 0.6931472, %v3277_v26 }
 0xb04   :  { %v2280_v15 = vsub.f32 %v4170_v56, %v2270_v12 }
 0xb0d   :  { %2291 = vrot.lane.b32.xlu0 %v2275_v7, %s3497_s5 }
 0xb0f   :  { %2293 = vrot.lane.b32.xlu1 %v2276_v10, %s3497_s5 }
 0xb11   :  { %2299 = vrot.lane.b32.xlu0 %v2279_v23, %s3497_s5 }
 0xb13   :  { %2295 = vrot.lane.b32.xlu1 %v2277_v25, %s3497_s5 }
 0xb17   :  { %2297 = vrot.lane.b32.xlu1 %v2278_v1, %s3497_s5 }
 0xb1b   :  { %2301 = vrot.lane.b32.xlu1 %v2280_v15, %s3497_s5 }
 0xb31   :  { %v2258_v40 = vpop.xlane.xlu1 %2257 }
 0xb32   :  { %3278 = vlog2.f32 %v2258_v40  ;;  %v2255_v39 = vpop.xlane.xlu0 %2254 }
 0xb33   :  { %3280 = vlog2.f32 %v2255_v39 }
 0xb36   :  { %v2099_v36 = vpop.xlane.xlu0 %2098 }
 0xb37   :  { %3282 = vlog2.f32 %v2099_v36 }
 0xb3a   :  { %v2105_v47 = vpop.xlane.xlu0 %2104 }
 0xb3b   :  { %3284 = vlog2.f32 %v2105_v47 }
 0xb3c   :  { %v3279_v27 = vpop.eup %3278 }
 0xb3d   :  { %v3281_v52 = vpop.eup %3280  ;;  %v2274_v33 = vmul.f32 0.6931472, %v3279_v27 }
 0xb3e   :  { %v2272_v22 = vmul.f32 0.6931472, %v3281_v52 }
 0xb3f   :  { %v2282_v31 = vsub.f32 %v4183_v34, %v2274_v33 }
 0xb40   :  { %v2281_v41 = vsub.f32 %v4186_v35, %v2272_v22 }
 0xb41   :  { %v3283_v45 = vpop.eup %3282  ;;  %2305 = vrot.lane.b32.xlu1 %v2282_v31, %s3497_s5 }
 0xb42   :  { %v2122_v56 = vmul.f32 0.6931472, %v3283_v45  ;;  %2303 = vrot.lane.b32.xlu0 %v2281_v41, %s3497_s5 }
 0xb44   :  { %v2137_v48 = vsub.f32 %v4211_v60, %v2122_v56 }
 0xb45   :  { %v3285_v53 = vpop.eup %3284 }
 0xb46   :  { %2145 = vst.msk [vmem:[#allocation15] sm:$0xff] %vm2048_vm2, %v2137_v48  ;;  %v2126_v5 = vmul.f32 0.6931472, %v3285_v53 }
 0xb48   :  { %v2139_v51 = vsub.f32 %v4215_v9, %v2126_v5 }
 0xb4a   :  { %2147 = vst.msk [vmem:[#allocation15 + $0x10] sm:$0xff] %vm2048_vm2, %v2139_v51 }
 0xb7f   :  { %v2102_v28 = vpop.xlane.xlu1 %2101 }
 0xb80   :  { %3286 = vlog2.f32 %v2102_v28  ;;  %v2111_v34 = vpop.xlane.xlu0 %2110 }
 0xb81   :  { %3288 = vlog2.f32 %v2111_v34 }
 0xb83   :  { %v2108_v35 = vpop.xlane.xlu1 %2107 }
 0xb84   :  { %3290 = vlog2.f32 %v2108_v35  ;;  %v2117_v42 = vpop.xlane.xlu0 %2116 }
 0xb85   :  { %3292 = vlog2.f32 %v2117_v42 }
 0xb87   :  { %v2114_v46 = vpop.xlane.xlu1 %2113 }
 0xb88   :  { %3294 = vlog2.f32 %v2114_v46  ;;  %v2292_v59 = vpop.permute.xlu0 %2291 }
 0xb89   :  { %2315 = vst.msk [vmem:[#allocation16] sm:$0xff] %vm2234_vm3, %v2292_v59 }
 0xb8a   :  { %v3287_v60 = vpop.eup %3286 }
 0xb8b   :  { %v3289_v54 = vpop.eup %3288  ;;  %v2124_v19 = vmul.f32 0.6931472, %v3287_v60  ;;  %v2120_v55 = vpop.xlane.xlu1 %2119 }
 0xb8c   :  { %v2130_v9 = vmul.f32 0.6931472, %v3289_v54  ;;  %3296 = vlog2.f32 %v2120_v55  ;;  %v2300_v61 = vpop.permute.xlu0 %2299 }
 0xb8d   :  { %v2138_v2 = vsub.f32 %v4226_v0, %v2124_v19  ;;  %2319 = vst.msk [vmem:[#allocation16 + $0x20] sm:$0xff] %vm2234_vm3, %v2300_v61 }
 0xb8e   :  { %v3291_v62 = vpop.eup %3290  ;;  %v2141_v16 = vsub.f32 %v4229_v21, %v2130_v9 }
 0xb8f   :  { %v3293_v63 = vpop.eup %3292  ;;  %2146 = vst.msk [vmem:[#allocation15 + $0x8] sm:$0xff] %vm2048_vm2, %v2138_v2  ;;  %v2128_v6 = vmul.f32 0.6931472, %v3291_v62  ;;  %v2294_v13 = vpop.permute.xlu1 %2293 }
 0xb90   :  { %2149 = vst.msk [vmem:[#allocation15 + $0x20] sm:$0xff] %vm2048_vm2, %v2141_v16  ;;  %v2134_v20 = vmul.f32 0.6931472, %v3293_v63 }
 0xb91   :  { %2316 = vst.msk [vmem:[#allocation16 + $0x8] sm:$0xff] %vm2234_vm3, %v2294_v13  ;;  %v2140_v30 = vsub.f32 %v4223_v49, %v2128_v6 }
 0xb92   :  { %v3295_v37 = vpop.eup %3294  ;;  %v2143_v0 = vsub.f32 %v4238_v57, %v2134_v20 }
 0xb93   :  { %2148 = vst.msk [vmem:[#allocation15 + $0x18] sm:$0xff] %vm2048_vm2, %v2140_v30  ;;  %v2132_v43 = vmul.f32 0.6931472, %v3295_v37  ;;  %v2296_v44 = vpop.permute.xlu1 %2295 }
 0xb94   :  { %2151 = vst.msk [vmem:[#allocation15 + $0x30] sm:$0xff] %vm2048_vm2, %v2143_v0 }
 0xb95   :  { %2317 = vst.msk [vmem:[#allocation16 + $0x10] sm:$0xff] %vm2234_vm3, %v2296_v44  ;;  %v2142_v21 = vsub.f32 %v4235_v29, %v2132_v43 }
 0xb96   :  { %v3297_v50 = vpop.eup %3296 }
 0xb97   :  { %2150 = vst.msk [vmem:[#allocation15 + $0x28] sm:$0xff] %vm2048_vm2, %v2142_v21  ;;  %v2136_v58 = vmul.f32 0.6931472, %v3297_v50  ;;  %v2298_v49 = vpop.permute.xlu1 %2297 }
 0xb98   :  { %2318 = vst.msk [vmem:[#allocation16 + $0x18] sm:$0xff] %vm2234_vm3, %v2298_v49 }
 0xb99   :  { %v2144_v57 = vsub.f32 %v4243_v32, %v2136_v58 }
 0xb9b   :  { %2152 = vst.msk [vmem:[#allocation15 + $0x38] sm:$0xff] %vm2048_vm2, %v2144_v57  ;;  %v2302_v3 = vpop.permute.xlu1 %2301 }
 0xb9c   :  { %2320 = vst.msk [vmem:[#allocation16 + $0x28] sm:$0xff] %vm2234_vm3, %v2302_v3 }
 0xb9d   :  { %3441 = shalt.err (!%p3438_p10)
}
 0xb9e   :  { %s3442_s9 = scalar_lea.hbm %s4328_s6, 1024 }
 0xb9f   :  { %p3443_p11 = scmp.ne.s32.totalorder %s4328_s6, %s3442_s9  ;;  %p3446_p12 = scmp.lt.u32.totalorder %s3442_s9, %s4328_s6 }
 0xba1   :  { %p3448_p13 = pnand %p3446_p12, %p3443_p11 }
 0xba3   :  { %3451 = shalt.err (!%p3448_p13)
}
 0xba4   :  { %2334 = dma.vmem_to_hbm [thread:$0]  %s2329_s18, 1024, %s4328_s6, [#allocation6], %s3491_s3, %s3491_s3, %s3492_s15  }
 0xba5   :  { %s3499_s11 = smov [#allocation16]  }
 0xba6   :  { %s2340_s12 = sshll.u32 %s3499_s11, 4  ;;  %s2341_s12 = int_to_ptr.vmem [resolvable:$true] %s2340_s12 }
 0xba7   :  { %s3452_s19 = scalar_lea.vmem %s2341_s12, 1024  ;;  %p3457_p1 = scmp.lt.s32.totalorder %s2341_s12, %s2341_s12 }
 0xba8   :  { %p3453_p0 = scmp.ne.s32.totalorder %s2341_s12, %s3452_s19  ;;  %p3458_p2 = scmp.lt.s32.totalorder %s3452_s19, %s3452_s19 }
 0xbaa   :  { %p3459_p3 = por %p3458_p2, %p3457_p1 }
 0xbac   :  { %p3460_p4 = pnand %p3459_p3, %p3453_p0 }
 0xbb3   :  { %v2306_v29 = vpop.permute.xlu1 %2305 }
 0xbb4   :  { %2322 = vst.msk [vmem:[#allocation16 + $0x38] sm:$0xff] %vm2234_vm3, %v2306_v29  ;;  %v2304_v32 = vpop.permute.xlu0 %2303 }
 0xbb5   :  { %2321 = vst.msk [vmem:[#allocation16 + $0x30] sm:$0xff] %vm2234_vm3, %v2304_v32 }
 0xbb6   :  { %3463 = shalt.err (!%p3460_p4)
}
 0xbb7   :  { %s3464_s6 = scalar_lea.hbm %s4329_s7, 1024 }
 0xbb8   :  { %p3465_p5 = scmp.ne.s32.totalorder %s4329_s7, %s3464_s6  ;;  %p3468_p6 = scmp.lt.u32.totalorder %s3464_s6, %s4329_s7 }
 0xbba   :  { %p3470_p7 = pnand %p3468_p6, %p3465_p5 }
 0xbbc   :  { %3473 = shalt.err (!%p3470_p7)
}
 0xbbd   :  { %2346 = dma.vmem_to_hbm [thread:$0]  %s2341_s12, 1024, %s4329_s7, [#allocation17], %s3491_s3, %s3491_s3, %s3492_s15  }
 0xbbe   :  { %3482 = dma.done.wait [#allocation6], 1024  }
 0xbbf   :  { %3483 = vsyncadd [#allocation6], 4294966272 }
 0xbc0   :  { %3484 = dma.done.wait [#allocation17], 1024  }
 0xbc1   :  { %3485 = vsyncadd [#allocation17], 4294966272 }
 0xbc2   :  { %2353 = vsyncpa [#allocation5], 1 }
 0xbc3   :  { %2354 = vsyncpa [#allocation8], 1 }
 0xbc4   :  { %2355 = vsyncpa [#allocation11], 1 }
 0xbc5   :  { %2356 = vsyncpa [#allocation14], 1 }
 0xbc6   :  { %2357 = vsyncpa [#allocation6], 1 }
 0xbc7   :  { %2358 = vsyncpa [#allocation17], 1 }

</bundles_post_ra>
